<compile_context>
chip_gen: v7x
topology: tpu7x:2x2x1
jax: 0.10.0
libtpu: 0.0.40
codegen_flags: <defaults>
</compile_context>

<pallas_src>
import functools

import jax
import jax.numpy as jnp
from jax import lax
from jax.experimental import pallas as pl
from jax.experimental.pallas import tpu as pltpu

LANES = 128
SUBLANES = 8


def _round_up(x, m):
    return ((x + m - 1) // m) * m


# -----------------------------------------------------------------------------
# Fused kernel (one program == one batch tile of BT rows):
#   DMA gather of embeddings + p_control + hoisted input projection
#   + unrolled masked LSTM recurrence + (c * X).max + BIM score.
# -----------------------------------------------------------------------------
def expan_match_kernel(
        # scalar prefetch (SMEM)
        ids_ref,       # (num_tiles*R,) i32   per-tile [q(BT) | u(BT) | path time-major]
        maxlen_ref,    # (1,)           i32   batch-global max(lens)
        # inputs
        lens_ref,      # (BT, 1)   i32        valid lengths (padded rows = 1)
        emb_hbm,       # (V, DP)   f32  HBM   padded embedding table
        wc_ref,        # (DP, HP)  bf16       p_control weight (cols >= H are 0)
        w_ih_ref,      # (DP, 4HP) bf16       LSTM input weights  [i|f|o|g]
        w_hh_ref,      # (HP, 4HP) bf16       LSTM hidden weights [i|f|o|g]
        b_ref,         # (1, 4HP)  f32        b_ih + b_hh (padded with 0)
        h0_ref,        # (BT, HP)  f32        initial hidden (pads = 0)
        c0_ref,        # (BT, HP)  f32        initial cell   (pads = 0)
        w_top_ref,     # (DP, DP)  bf16       BIM rows acting on hu
        w_bot_ref,     # (HP, DP)  bf16       BIM rows acting on hpu (rows >= H are 0)
        # outputs
        out_ref,       # (BT, 128) f32        per-row score broadcast across lanes
        # scratch
        gbuf,          # (R, DP)   f32  VMEM  gathered embedding rows
        pre_ref,       # (T*BT, 4HP) f32 VMEM hoisted pre-gates
        sem,           # DMA semaphore
):
    BT = lens_ref.shape[0]
    HP = h0_ref.shape[1]
    R = gbuf.shape[0]
    T = pre_ref.shape[0] // BT
    tile = pl.program_id(0)
    base = tile * R

    # ---- in-kernel DMA gather: R rows of the HBM embedding table -> VMEM ----
    # (replaces the O(B*T*V) one-hot matmul; the table never enters VMEM)
    @pl.loop(0, R)
    def _issue(r):
        row_id = ids_ref[base + r]
        pltpu.make_async_copy(emb_hbm.at[pl.ds(row_id, 1), :],
                              gbuf.at[pl.ds(r, 1), :], sem).start()

    @pl.loop(0, R)
    def _drain(r):
        pltpu.make_async_copy(emb_hbm.at[pl.ds(0, 1), :],
                              gbuf.at[pl.ds(r, 1), :], sem).wait()

    qf = gbuf[0:BT, :]                                         # (BT, DP) f32 (exact)
    hu_bf = gbuf[BT:2 * BT, :].astype(jnp.bfloat16)            # (BT, DP)
    p_bf = gbuf[2 * BT:, :].astype(jnp.bfloat16)               # (T*BT, DP), row = t*BT + b

    # ---- p_control + hoisted input projection (streaming MXU matmuls) ----
    c_gate = jnp.maximum(
        jnp.dot(p_bf[0:BT], wc_ref[...],
                preferred_element_type=jnp.float32), 0.0)      # (BT, HP)
    pre_ref[...] = (jnp.dot(p_bf, w_ih_ref[...],
                            preferred_element_type=jnp.float32)
                    + b_ref[...])                              # (T*BT, 4HP)

    lens = lens_ref[...]                                       # (BT, 1) i32
    max_len = maxlen_ref[0]
    neg_inf = jnp.float32(-jnp.inf)

    # ---- LSTM recurrence: static bound T, fully unrolled for small T ----
    # Contribution mask (matches pack_padded/pad_packed semantics exactly):
    #   t <  lens[b]            -> c_gate * h_t
    #   lens[b] <= t < max_len  -> 0      (pad_packed zero rows)
    #   t >= max_len            -> -inf   (row does not exist in the ref output)
    def step(t, carry):
        h, c, m = carry
        row = t * BT
        if not isinstance(t, int):
            row = pl.multiple_of(row, BT)
        gates = (pre_ref[pl.ds(row, BT), :] +
                 jnp.dot(h.astype(jnp.bfloat16), w_hh_ref[...],
                         preferred_element_type=jnp.float32))  # (BT, 4HP)
        sig = jax.nn.sigmoid(gates[:, 0:3 * HP])               # [i|f|o] in one pass
        i_g = sig[:, 0 * HP:1 * HP]
        f_g = sig[:, 1 * HP:2 * HP]
        o_g = sig[:, 2 * HP:3 * HP]
        g_g = jnp.tanh(gates[:, 3 * HP:4 * HP])
        c_new = f_g * c + i_g * g_g
        h_new = o_g * jnp.tanh(c_new)
        pad = jnp.where(t < max_len, 0.0, neg_inf)
        contrib = jnp.where(t < lens, c_gate * h_new, pad)
        return h_new, c_new, jnp.maximum(m, contrib)

    init = (h0_ref[...], c0_ref[...],
            jnp.full((BT, HP), -jnp.inf, jnp.float32))
    # NOTE: if max(lens) == 0 the running max stays -inf (PyTorch would raise).
    _, _, hpu = lax.fori_loop(0, T, step, init,
                              unroll=True if T <= 32 else 4)

    # ---- fused BIM: score = sum((hu @ W_top + hpu @ W_bot) * qf, axis=-1) ----
    tmp = (jnp.dot(hu_bf, w_top_ref[...], preferred_element_type=jnp.float32) +
           jnp.dot(hpu.astype(jnp.bfloat16), w_bot_ref[...],
                   preferred_element_type=jnp.float32))        # (BT, DP)
    score = jnp.sum(tmp * qf, axis=-1, keepdims=True)          # (BT, 1)
    out_ref[...] = jnp.broadcast_to(score, (BT, LANES))        # lane-dense store


# -----------------------------------------------------------------------------
# Parameter preparation: pad in_dim/out_dim to the 128-lane floor, reorder
# gates to [i|f|o|g], cast MXU operands to bf16.  Done once, off the hot path.
# -----------------------------------------------------------------------------
_GATE_ORDER = (0, 1, 3, 2)   # raw [i, f, g, o] -> kernel [i, f, o, g]


def _reorder_pad_gates(w, H, HP):
    """(..., 4H) in raw [i|f|g|o] order -> (..., 4HP) in kernel [i|f|o|g] order."""
    out = jnp.zeros(w.shape[:-1] + (4 * HP,), w.dtype)
    for dst, src in enumerate(_GATE_ORDER):
        out = out.at[..., dst * HP:dst * HP + H].set(w[..., src * H:(src + 1) * H])
    return out


def prepare_params(raw):
    V, in_dim = raw["embedding"].shape
    out_dim = raw["wc"].shape[1]
    DP = _round_up(in_dim, LANES)
    HP = _round_up(out_dim, LANES)

    emb = jnp.zeros((V, DP), jnp.float32).at[:, :in_dim].set(raw["embedding"])
    wc = jnp.zeros((DP, HP), jnp.float32).at[:in_dim, :out_dim].set(raw["wc"])
    w_ih = jnp.zeros((DP, 4 * HP), jnp.float32).at[:in_dim].set(
        _reorder_pad_gates(raw["w_ih"], out_dim, HP))
    w_hh = jnp.zeros((HP, 4 * HP), jnp.float32).at[:out_dim].set(
        _reorder_pad_gates(raw["w_hh"], out_dim, HP))
    b = _reorder_pad_gates(raw["b"], out_dim, HP)
    w_top = jnp.zeros((DP, DP), jnp.float32).at[:in_dim, :in_dim].set(
        raw["w_bim"][:in_dim])
    w_bot = jnp.zeros((HP, DP), jnp.float32).at[:out_dim, :in_dim].set(
        raw["w_bim"][in_dim:])

    bf = jnp.bfloat16
    return {
        "emb": emb,                                   # f32, HBM, DMA-gathered
        "wc": wc.astype(bf), "w_ih": w_ih.astype(bf), "w_hh": w_hh.astype(bf),
        "b": b.astype(jnp.float32),
        "w_top": w_top.astype(bf), "w_bot": w_bot.astype(bf),
    }


# -----------------------------------------------------------------------------
# Forward wrapper.  block_b = batch rows per kernel instance; use 64-128 in
# production so the per-step recurrence matmul fills more MXU rows.
# -----------------------------------------------------------------------------
@functools.partial(jax.jit, static_argnames=("block_b",))
def expan_match_forward(pp, q_ids, u_ids, p_ids, lens, h0, c0, *, block_b=8):
    B, T = p_ids.shape
    H = h0.shape[1]
    V, DP = pp["emb"].shape
    HP = pp["w_hh"].shape[0]

    BT = _round_up(max(block_b, SUBLANES), SUBLANES)
    BP = _round_up(max(B, 1), BT)
    num_tiles = BP // BT
    R = (T + 2) * BT

    # ---- pad batch to BP; padded rows: id 0, len 1, zero state ----
    def pad_ids(x, shape):
        # out-of-range ids are clamped (PyTorch's nn.Embedding would raise).
        return jnp.zeros(shape, jnp.int32).at[:B].set(
            jnp.clip(x.astype(jnp.int32), 0, V - 1))

    q_p = pad_ids(q_ids, (BP,))
    u_p = pad_ids(u_ids, (BP,))
    p_p = pad_ids(p_ids, (BP, T))

    # per-tile id layout: [q(BT) | u(BT) | path time-major (T*BT)]
    q_t = q_p.reshape(num_tiles, BT)
    u_t = u_p.reshape(num_tiles, BT)
    p_t = p_p.reshape(num_tiles, BT, T).transpose(0, 2, 1).reshape(num_tiles, T * BT)
    ids_flat = jnp.concatenate([q_t, u_t, p_t], axis=1).reshape(-1)

    lens_i = lens.astype(jnp.int32)
    lens_p = jnp.ones((BP, 1), jnp.int32).at[:B, 0].set(lens_i)
    max_len = jnp.max(lens_i).reshape(1)                        # batch-global

    h0_p = jnp.zeros((BP, HP), jnp.float32).at[:B, :H].set(h0)
    c0_p = jnp.zeros((BP, HP), jnp.float32).at[:B, :H].set(c0)

    # ---- explicit VMEM budget from the actual resident set ----
    weight_bytes = sum(int(pp[k].size) * pp[k].dtype.itemsize
                       for k in ("wc", "w_ih", "w_hh", "b", "w_top", "w_bot"))
    tile_bytes = (BT * 1 * 4) + 2 * (BT * HP * 4) + (BT * LANES * 4)
    scratch_bytes = R * DP * 4 + T * BT * 4 * HP * 4
    vmem_limit = int(min(100 << 20,
                         max(16 << 20,
                             2 * weight_bytes + 4 * tile_bytes
                             + scratch_bytes + (8 << 20))))

    const = lambda i, ids, ml: (0, 0)        # weights: VMEM-resident across tiles
    per_tile = lambda i, ids, ml: (i, 0)

    out = pl.pallas_call(
        expan_match_kernel,
        out_shape=jax.ShapeDtypeStruct((BP, LANES), jnp.float32),
        grid_spec=pltpu.PrefetchScalarGridSpec(
            num_scalar_prefetch=2,
            grid=(num_tiles,),
            in_specs=[
                pl.BlockSpec((BT, 1), per_tile),                 # lens
                pl.BlockSpec(memory_space=pl.ANY),               # embedding (HBM)
                pl.BlockSpec((DP, HP), const),                   # wc
                pl.BlockSpec((DP, 4 * HP), const),               # w_ih
                pl.BlockSpec((HP, 4 * HP), const),               # w_hh
                pl.BlockSpec((1, 4 * HP), const),                # b
                pl.BlockSpec((BT, HP), per_tile),                # h0
                pl.BlockSpec((BT, HP), per_tile),                # c0
                pl.BlockSpec((DP, DP), const),                   # w_top
                pl.BlockSpec((HP, DP), const),                   # w_bot
            ],
            out_specs=pl.BlockSpec((BT, LANES), per_tile),
            scratch_shapes=[
                pltpu.VMEM((R, DP), jnp.float32),                # gathered rows
                pltpu.VMEM((T * BT, 4 * HP), jnp.float32),       # pre-gates
                pltpu.SemaphoreType.DMA(()),
            ]),
        compiler_params=pltpu.CompilerParams(
            dimension_semantics=("parallel",),
            vmem_limit_bytes=vmem_limit),
    )(ids_flat, max_len, lens_p, pp["emb"], pp["wc"], pp["w_ih"], pp["w_hh"],
      pp["b"], h0_p, c0_p, pp["w_top"], pp["w_bot"])

    return out[:B, 0:1]                                          # (B, 1)


# -----------------------------------------------------------------------------
# Pure-JAX f32 reference (PyTorch semantics) for validation.
# -----------------------------------------------------------------------------
def reference_forward(raw, q_ids, u_ids, p_ids, lens, h0, c0):
    emb = raw["embedding"]
    qf = emb[q_ids]
    hu = emb[u_ids]
    p = emb[p_ids]                                               # (B, T, D)
    H = raw["wc"].shape[1]
    c_gate = jnp.maximum(p[:, 0, :] @ raw["wc"], 0.0)            # (B, H)
    max_len = int(jnp.max(lens))
    h, c = h0, c0
    xs = []
    for t in range(max_len):
        gates = p[:, t, :] @ raw["w_ih"] + h @ raw["w_hh"] + raw["b"]
        i_g = jax.nn.sigmoid(gates[:, 0:H])
        f_g = jax.nn.sigmoid(gates[:, H:2 * H])
        g_g = jnp.tanh(gates[:, 2 * H:3 * H])
        o_g = jax.nn.sigmoid(gates[:, 3 * H:4 * H])
        c = f_g * c + i_g * g_g
        h = o_g * jnp.tanh(c)
        xs.append(jnp.where((t < lens)[:, None], h, 0.0))        # pad_packed zeros
    X = jnp.stack(xs, axis=1)                                    # (B, max_len, H)
    hpu = jnp.max(c_gate[:, None, :] * X, axis=1)                # (B, H)
    ur = jnp.concatenate([hu, hpu], axis=-1)                     # (B, in+out)
    return ((ur @ raw["w_bim"]) * qf).sum(-1, keepdims=True)     # (B, 1)


# -----------------------------------------------------------------------------
# Main: deterministic params / inputs, run once, validate, print KERNEL_OK.
# -----------------------------------------------------------------------------
if __name__ == "__main__":
    B, T = 10, 8
    VOCAB, IN_DIM, OUT_DIM = 50, 32, 32
    L_DIM, R_DIM = IN_DIM + OUT_DIM, IN_DIM                      # mode 'rp'

    key = jax.random.PRNGKey(0)
    ks = jax.random.split(key, 12)
    scale = 0.1
    raw = {
        "embedding": scale * jax.random.normal(ks[0], (VOCAB, IN_DIM), jnp.float32),
        "wc":   scale * jax.random.normal(ks[1], (IN_DIM, OUT_DIM), jnp.float32),
        "w_ih": scale * jax.random.normal(ks[2], (IN_DIM, 4 * OUT_DIM), jnp.float32),
        "w_hh": scale * jax.random.normal(ks[3], (OUT_DIM, 4 * OUT_DIM), jnp.float32),
        "b":    scale * jax.random.normal(ks[4], (1, 4 * OUT_DIM), jnp.float32),
        "w_bim": scale * jax.random.normal(ks[5], (L_DIM, R_DIM), jnp.float32),
    }
    pp = prepare_params(raw)

    q_ids = jax.random.randint(ks[6], (B,), 0, VOCAB)
    u_ids = jax.random.randint(ks[7], (B,), 0, VOCAB)
    p_ids = jax.random.randint(ks[8], (B, T), 0, VOCAB)
    lens = jax.random.randint(ks[9], (B,), 1, T + 1).astype(jnp.int32)
    # init_hidden uses torch.randn each call; deterministic equivalent here.
    h0 = jax.random.normal(ks[10], (B, OUT_DIM), jnp.float32)
    c0 = jax.random.normal(ks[11], (B, OUT_DIM), jnp.float32)

    scores = expan_match_forward(pp, q_ids, u_ids, p_ids, lens, h0, c0)
    jax.block_until_ready(scores)

    ref = reference_forward(raw, q_ids, u_ids, p_ids, lens, h0, c0)
    assert scores.shape == (B, 1)
    assert bool(jnp.all(jnp.isfinite(scores)))
    assert bool(jnp.allclose(scores, ref, atol=5e-3, rtol=5e-2)), (scores, ref)
    print("KERNEL_OK")
</pallas_src>

<mosaic_0001>
module attributes {stable_mosaic.version = 11 : i64} {
  func.func @expan_match_kernel(%arg0: i32, %arg1: memref<160xi32, #tpu.memory_space<smem>>, %arg2: memref<1xi32, #tpu.memory_space<smem>>, %arg3: memref<8x1xi32, #tpu.memory_space<vmem>>, %arg4: memref<50x128xf32, #tpu.memory_space<any>>, %arg5: memref<128x128xbf16, #tpu.memory_space<vmem>>, %arg6: memref<128x512xbf16, #tpu.memory_space<vmem>>, %arg7: memref<128x512xbf16, #tpu.memory_space<vmem>>, %arg8: memref<1x512xf32, #tpu.memory_space<vmem>>, %arg9: memref<8x128xf32, #tpu.memory_space<vmem>>, %arg10: memref<8x128xf32, #tpu.memory_space<vmem>>, %arg11: memref<128x128xbf16, #tpu.memory_space<vmem>>, %arg12: memref<128x128xbf16, #tpu.memory_space<vmem>>, %arg13: memref<8x128xf32, #tpu.memory_space<vmem>>, %arg14: memref<80x128xf32, #tpu.memory_space<vmem>>, %arg15: memref<64x512xf32, #tpu.memory_space<vmem>>, %arg16: memref<!tpu.dma_semaphore, #tpu.memory_space<semaphore_mem>>) attributes {dimension_semantics = [#tpu.dimension_semantics<parallel>], iteration_bounds = array<i64: 2>, scalar_prefetch = 2 : i64, scratch_operands = 3 : i64, tpu.core_type = #tpu.core_type<tc>, window_params = [{transform_indices = @transform_0, window_bounds = array<i64: 8, 1>}, {}, {pipeline_mode = #tpu.pipeline_mode<synchronous>, transform_indices = @transform_2, window_bounds = array<i64: 128, 128>}, {pipeline_mode = #tpu.pipeline_mode<synchronous>, transform_indices = @transform_3, window_bounds = array<i64: 128, 512>}, {pipeline_mode = #tpu.pipeline_mode<synchronous>, transform_indices = @transform_4, window_bounds = array<i64: 128, 512>}, {pipeline_mode = #tpu.pipeline_mode<synchronous>, transform_indices = @transform_5, window_bounds = array<i64: 1, 512>}, {transform_indices = @transform_6, window_bounds = array<i64: 8, 128>}, {transform_indices = @transform_7, window_bounds = array<i64: 8, 128>}, {pipeline_mode = #tpu.pipeline_mode<synchronous>, transform_indices = @transform_8, window_bounds = array<i64: 128, 128>}, {pipeline_mode = #tpu.pipeline_mode<synchronous>, transform_indices = @transform_9, window_bounds = array<i64: 128, 128>}, {transform_indices = @transform_10, window_bounds = array<i64: 8, 128>}]} {
    %c80_i32 = arith.constant 80 : i32
    %0 = arith.muli %arg0, %c80_i32 : i32
    %c0_i32 = arith.constant 0 : i32
    %c80_i32_0 = arith.constant 80 : i32
    %1 = arith.addi %c0_i32, %c80_i32_0 : i32
    %c1_i32 = arith.constant 1 : i32
    scf.for %arg17 = %c0_i32 to %1 step %c1_i32  : i32 {
      %c1_i32_95 = arith.constant 1 : i32
      %308 = arith.muli %arg17, %c1_i32_95 : i32
      %c0_i32_96 = arith.constant 0 : i32
      %309 = arith.addi %c0_i32_96, %308 : i32
      %310 = arith.addi %0, %309 : i32
      %311 = arith.index_cast %310 : i32 to index
      %312 = memref.load %arg1[%311] : memref<160xi32, #tpu.memory_space<smem>>
      %c0_i32_97 = arith.constant 0 : i32
      %313 = tpu.memref_slice %arg4[%312, %c0_i32_97] : memref<50x128xf32, #tpu.memory_space<any>> -> memref<1x128xf32, #tpu.memory_space<any>>
      %c0_i32_98 = arith.constant 0 : i32
      %314 = tpu.memref_slice %arg14[%309, %c0_i32_98] : memref<80x128xf32, #tpu.memory_space<vmem>> -> memref<1x128xf32, #tpu.memory_space<vmem>>
      tpu.enqueue_dma source(%313 : memref<1x128xf32, #tpu.memory_space<any>>) target(%314 : memref<1x128xf32, #tpu.memory_space<vmem>>) target_semaphore(%arg16 : memref<!tpu.dma_semaphore, #tpu.memory_space<semaphore_mem>>)
    }
    %c80_i32_1 = arith.constant 80 : i32
    %c0_i32_2 = arith.constant 0 : i32
    %c80_i32_3 = arith.constant 80 : i32
    %2 = arith.addi %c0_i32_2, %c80_i32_3 : i32
    %c1_i32_4 = arith.constant 1 : i32
    scf.for %arg17 = %c0_i32_2 to %2 step %c1_i32_4  : i32 {
      %c1_i32_95 = arith.constant 1 : i32
      %308 = arith.muli %arg17, %c1_i32_95 : i32
      %c0_i32_96 = arith.constant 0 : i32
      %309 = arith.addi %c0_i32_96, %308 : i32
      %c0_i32_97 = arith.constant 0 : i32
      %c0_i32_98 = arith.constant 0 : i32
      %310 = tpu.memref_slice %arg4[%c0_i32_97, %c0_i32_98] : memref<50x128xf32, #tpu.memory_space<any>> -> memref<1x128xf32, #tpu.memory_space<any>>
      %c0_i32_99 = arith.constant 0 : i32
      %311 = tpu.memref_slice %arg14[%309, %c0_i32_99] : memref<80x128xf32, #tpu.memory_space<vmem>> -> memref<1x128xf32, #tpu.memory_space<vmem>>
      tpu.wait_dma2 semaphore(%arg16 : memref<!tpu.dma_semaphore, #tpu.memory_space<semaphore_mem>>) src(%310 : memref<1x128xf32, #tpu.memory_space<any>>) dst(%311 : memref<1x128xf32, #tpu.memory_space<vmem>>)
    }
    %c80_i32_5 = arith.constant 80 : i32
    %c0 = arith.constant 0 : index
    %c0_6 = arith.constant 0 : index
    %3 = vector.load %arg14[%c0, %c0_6] : memref<80x128xf32, #tpu.memory_space<vmem>>, vector<8x128xf32>
    %c8 = arith.constant 8 : index
    %c0_7 = arith.constant 0 : index
    %4 = vector.load %arg14[%c8, %c0_7] : memref<80x128xf32, #tpu.memory_space<vmem>>, vector<8x128xf32>
    %5 = arith.truncf %4 : vector<8x128xf32> to vector<8x128xbf16>
    %c16 = arith.constant 16 : index
    %c0_8 = arith.constant 0 : index
    %6 = vector.load %arg14[%c16, %c0_8] : memref<80x128xf32, #tpu.memory_space<vmem>>, vector<64x128xf32>
    %7 = arith.truncf %6 : vector<64x128xf32> to vector<64x128xbf16>
    %8 = vector.extract_strided_slice %7 {offsets = [0, 0], sizes = [8, 128], strides = [1, 1]} : vector<64x128xbf16> to vector<8x128xbf16>
    %c0_9 = arith.constant 0 : index
    %c0_10 = arith.constant 0 : index
    %9 = vector.load %arg5[%c0_9, %c0_10] : memref<128x128xbf16, #tpu.memory_space<vmem>>, vector<128x128xbf16>
    %cst = arith.constant dense<0.000000e+00> : vector<8x128xf32>
    %10 = tpu.matmul %8, %9, %cst {dimension_numbers = #tpu.dot_dimension_numbers<[1], [0], [0], [1], [0, 0, 1, 1], [], []>} : vector<8x128xbf16>, vector<128x128xbf16>, vector<8x128xf32> -> vector<8x128xf32>
    %cst_11 = arith.constant 0.000000e+00 : f32
    %11 = vector.broadcast %cst_11 : f32 to vector<8x128xf32>
    %12 = arith.maximumf %10, %11 : vector<8x128xf32>
    %c0_12 = arith.constant 0 : index
    %c0_13 = arith.constant 0 : index
    %13 = vector.load %arg6[%c0_12, %c0_13] : memref<128x512xbf16, #tpu.memory_space<vmem>>, vector<128x512xbf16>
    %cst_14 = arith.constant dense<0.000000e+00> : vector<64x512xf32>
    %14 = tpu.matmul %7, %13, %cst_14 {dimension_numbers = #tpu.dot_dimension_numbers<[1], [0], [0], [1], [0, 0, 1, 1], [], []>} : vector<64x128xbf16>, vector<128x512xbf16>, vector<64x512xf32> -> vector<64x512xf32>
    %c0_15 = arith.constant 0 : index
    %c0_16 = arith.constant 0 : index
    %15 = vector.load %arg8[%c0_15, %c0_16] : memref<1x512xf32, #tpu.memory_space<vmem>>, vector<1x512xf32>
    %16 = vector.broadcast %15 : vector<1x512xf32> to vector<64x512xf32>
    %17 = arith.addf %14, %16 : vector<64x512xf32>
    %c0_17 = arith.constant 0 : index
    %c0_18 = arith.constant 0 : index
    %18 = vector.load %arg15[%c0_17, %c0_18] : memref<64x512xf32, #tpu.memory_space<vmem>>, vector<64x512xf32>
    tpu.vector_store %arg15[%c0_17, %c0_18], %17 {strides = array<i32>} : memref<64x512xf32, #tpu.memory_space<vmem>>, vector<64x512xf32>,
    %c0_19 = arith.constant 0 : index
    %c0_20 = arith.constant 0 : index
    %19 = vector.load %arg3[%c0_19, %c0_20] : memref<8x1xi32, #tpu.memory_space<vmem>>, vector<8x1xi32>
    %c0_21 = arith.constant 0 : index
    %20 = memref.load %arg2[%c0_21] : memref<1xi32, #tpu.memory_space<smem>>
    %c0_22 = arith.constant 0 : index
    %c0_23 = arith.constant 0 : index
    %21 = vector.load %arg9[%c0_22, %c0_23] : memref<8x128xf32, #tpu.memory_space<vmem>>, vector<8x128xf32>
    %c0_24 = arith.constant 0 : index
    %c0_25 = arith.constant 0 : index
    %22 = vector.load %arg10[%c0_24, %c0_25] : memref<8x128xf32, #tpu.memory_space<vmem>>, vector<8x128xf32>
    %cst_26 = arith.constant 0xFF800000 : f32
    %23 = vector.broadcast %cst_26 : f32 to vector<8x128xf32>
    %cst_27 = arith.constant 0xFF800000 : f32
    %c0_i32_28 = arith.constant 0 : i32
    %c8_i32 = arith.constant 8 : i32
    %24 = arith.muli %c0_i32_28, %c8_i32 : i32
    %25 = tpu.assume_multiple %24, 8 : i32
    %26 = arith.index_cast %25 : i32 to index
    %c0_29 = arith.constant 0 : index
    %27 = vector.load %arg15[%26, %c0_29] : memref<64x512xf32, #tpu.memory_space<vmem>>, vector<8x512xf32>
    %28 = arith.truncf %21 : vector<8x128xf32> to vector<8x128xbf16>
    %c0_30 = arith.constant 0 : index
    %c0_31 = arith.constant 0 : index
    %29 = vector.load %arg7[%c0_30, %c0_31] : memref<128x512xbf16, #tpu.memory_space<vmem>>, vector<128x512xbf16>
    %cst_32 = arith.constant dense<0.000000e+00> : vector<8x512xf32>
    %30 = tpu.matmul %28, %29, %cst_32 {dimension_numbers = #tpu.dot_dimension_numbers<[1], [0], [0], [1], [0, 0, 1, 1], [], []>} : vector<8x128xbf16>, vector<128x512xbf16>, vector<8x512xf32> -> vector<8x512xf32>
    %31 = arith.addf %27, %30 : vector<8x512xf32>
    %32 = vector.extract_strided_slice %31 {offsets = [0, 0], sizes = [8, 384], strides = [1, 1]} : vector<8x512xf32> to vector<8x384xf32>
    %33 = arith.negf %32 : vector<8x384xf32>
    %34 = math.exp %33 : vector<8x384xf32>
    %cst_33 = arith.constant 1.000000e+00 : f32
    %35 = vector.broadcast %cst_33 : f32 to vector<8x384xf32>
    %36 = arith.addf %35, %34 : vector<8x384xf32>
    %37 = arith.divf %35, %36 : vector<8x384xf32>
    %38 = vector.extract_strided_slice %37 {offsets = [0, 0], sizes = [8, 128], strides = [1, 1]} : vector<8x384xf32> to vector<8x128xf32>
    %39 = vector.extract_strided_slice %37 {offsets = [0, 128], sizes = [8, 128], strides = [1, 1]} : vector<8x384xf32> to vector<8x128xf32>
    %40 = vector.extract_strided_slice %37 {offsets = [0, 256], sizes = [8, 128], strides = [1, 1]} : vector<8x384xf32> to vector<8x128xf32>
    %41 = vector.extract_strided_slice %31 {offsets = [0, 384], sizes = [8, 128], strides = [1, 1]} : vector<8x512xf32> to vector<8x128xf32>
    %42 = math.tanh %41 : vector<8x128xf32>
    %43 = arith.mulf %39, %22 : vector<8x128xf32>
    %44 = arith.mulf %38, %42 : vector<8x128xf32>
    %45 = arith.addf %43, %44 : vector<8x128xf32>
    %46 = math.tanh %45 : vector<8x128xf32>
    %47 = arith.mulf %40, %46 : vector<8x128xf32>
    %48 = arith.cmpi slt, %c0_i32_28, %20 : i32
    %cst_34 = arith.constant 0.000000e+00 : f32
    %49 = arith.select %48, %cst_34, %cst_27 : f32
    %50 = vector.broadcast %c0_i32_28 : i32 to vector<8x1xi32>
    %51 = arith.cmpi slt, %50, %19 : vector<8x1xi32>
    %52 = arith.mulf %12, %47 : vector<8x128xf32>
    %53 = vector.shape_cast %51 : vector<8x1xi1> to vector<8x1xi1>
    %54 = vector.broadcast %53 : vector<8x1xi1> to vector<8x128xi1>
    %55 = vector.broadcast %49 : f32 to vector<8x128xf32>
    %56 = arith.select %54, %52, %55 : vector<8x128xi1>, vector<8x128xf32>
    %57 = arith.maximumf %23, %56 : vector<8x128xf32>
    %c1_i32_35 = arith.constant 1 : i32
    %c8_i32_36 = arith.constant 8 : i32
    %58 = arith.muli %c1_i32_35, %c8_i32_36 : i32
    %59 = tpu.assume_multiple %58, 8 : i32
    %60 = arith.index_cast %59 : i32 to index
    %c0_37 = arith.constant 0 : index
    %61 = vector.load %arg15[%60, %c0_37] : memref<64x512xf32, #tpu.memory_space<vmem>>, vector<8x512xf32>
    %62 = arith.truncf %47 : vector<8x128xf32> to vector<8x128xbf16>
    %c0_38 = arith.constant 0 : index
    %c0_39 = arith.constant 0 : index
    %63 = vector.load %arg7[%c0_38, %c0_39] : memref<128x512xbf16, #tpu.memory_space<vmem>>, vector<128x512xbf16>
    %cst_40 = arith.constant dense<0.000000e+00> : vector<8x512xf32>
    %64 = tpu.matmul %62, %63, %cst_40 {dimension_numbers = #tpu.dot_dimension_numbers<[1], [0], [0], [1], [0, 0, 1, 1], [], []>} : vector<8x128xbf16>, vector<128x512xbf16>, vector<8x512xf32> -> vector<8x512xf32>
    %65 = arith.addf %61, %64 : vector<8x512xf32>
    %66 = vector.extract_strided_slice %65 {offsets = [0, 0], sizes = [8, 384], strides = [1, 1]} : vector<8x512xf32> to vector<8x384xf32>
    %67 = arith.negf %66 : vector<8x384xf32>
    %68 = math.exp %67 : vector<8x384xf32>
    %cst_41 = arith.constant 1.000000e+00 : f32
    %69 = vector.broadcast %cst_41 : f32 to vector<8x384xf32>
    %70 = arith.addf %69, %68 : vector<8x384xf32>
    %71 = arith.divf %69, %70 : vector<8x384xf32>
    %72 = vector.extract_strided_slice %71 {offsets = [0, 0], sizes = [8, 128], strides = [1, 1]} : vector<8x384xf32> to vector<8x128xf32>
    %73 = vector.extract_strided_slice %71 {offsets = [0, 128], sizes = [8, 128], strides = [1, 1]} : vector<8x384xf32> to vector<8x128xf32>
    %74 = vector.extract_strided_slice %71 {offsets = [0, 256], sizes = [8, 128], strides = [1, 1]} : vector<8x384xf32> to vector<8x128xf32>
    %75 = vector.extract_strided_slice %65 {offsets = [0, 384], sizes = [8, 128], strides = [1, 1]} : vector<8x512xf32> to vector<8x128xf32>
    %76 = math.tanh %75 : vector<8x128xf32>
    %77 = arith.mulf %73, %45 : vector<8x128xf32>
    %78 = arith.mulf %72, %76 : vector<8x128xf32>
    %79 = arith.addf %77, %78 : vector<8x128xf32>
    %80 = math.tanh %79 : vector<8x128xf32>
    %81 = arith.mulf %74, %80 : vector<8x128xf32>
    %82 = arith.cmpi slt, %c1_i32_35, %20 : i32
    %cst_42 = arith.constant 0.000000e+00 : f32
    %83 = arith.select %82, %cst_42, %cst_27 : f32
    %84 = vector.broadcast %c1_i32_35 : i32 to vector<8x1xi32>
    %85 = arith.cmpi slt, %84, %19 : vector<8x1xi32>
    %86 = arith.mulf %12, %81 : vector<8x128xf32>
    %87 = vector.shape_cast %85 : vector<8x1xi1> to vector<8x1xi1>
    %88 = vector.broadcast %87 : vector<8x1xi1> to vector<8x128xi1>
    %89 = vector.broadcast %83 : f32 to vector<8x128xf32>
    %90 = arith.select %88, %86, %89 : vector<8x128xi1>, vector<8x128xf32>
    %91 = arith.maximumf %57, %90 : vector<8x128xf32>
    %c2_i32 = arith.constant 2 : i32
    %c8_i32_43 = arith.constant 8 : i32
    %92 = arith.muli %c2_i32, %c8_i32_43 : i32
    %93 = tpu.assume_multiple %92, 8 : i32
    %94 = arith.index_cast %93 : i32 to index
    %c0_44 = arith.constant 0 : index
    %95 = vector.load %arg15[%94, %c0_44] : memref<64x512xf32, #tpu.memory_space<vmem>>, vector<8x512xf32>
    %96 = arith.truncf %81 : vector<8x128xf32> to vector<8x128xbf16>
    %c0_45 = arith.constant 0 : index
    %c0_46 = arith.constant 0 : index
    %97 = vector.load %arg7[%c0_45, %c0_46] : memref<128x512xbf16, #tpu.memory_space<vmem>>, vector<128x512xbf16>
    %cst_47 = arith.constant dense<0.000000e+00> : vector<8x512xf32>
    %98 = tpu.matmul %96, %97, %cst_47 {dimension_numbers = #tpu.dot_dimension_numbers<[1], [0], [0], [1], [0, 0, 1, 1], [], []>} : vector<8x128xbf16>, vector<128x512xbf16>, vector<8x512xf32> -> vector<8x512xf32>
    %99 = arith.addf %95, %98 : vector<8x512xf32>
    %100 = vector.extract_strided_slice %99 {offsets = [0, 0], sizes = [8, 384], strides = [1, 1]} : vector<8x512xf32> to vector<8x384xf32>
    %101 = arith.negf %100 : vector<8x384xf32>
    %102 = math.exp %101 : vector<8x384xf32>
    %cst_48 = arith.constant 1.000000e+00 : f32
    %103 = vector.broadcast %cst_48 : f32 to vector<8x384xf32>
    %104 = arith.addf %103, %102 : vector<8x384xf32>
    %105 = arith.divf %103, %104 : vector<8x384xf32>
    %106 = vector.extract_strided_slice %105 {offsets = [0, 0], sizes = [8, 128], strides = [1, 1]} : vector<8x384xf32> to vector<8x128xf32>
    %107 = vector.extract_strided_slice %105 {offsets = [0, 128], sizes = [8, 128], strides = [1, 1]} : vector<8x384xf32> to vector<8x128xf32>
    %108 = vector.extract_strided_slice %105 {offsets = [0, 256], sizes = [8, 128], strides = [1, 1]} : vector<8x384xf32> to vector<8x128xf32>
    %109 = vector.extract_strided_slice %99 {offsets = [0, 384], sizes = [8, 128], strides = [1, 1]} : vector<8x512xf32> to vector<8x128xf32>
    %110 = math.tanh %109 : vector<8x128xf32>
    %111 = arith.mulf %107, %79 : vector<8x128xf32>
    %112 = arith.mulf %106, %110 : vector<8x128xf32>
    %113 = arith.addf %111, %112 : vector<8x128xf32>
    %114 = math.tanh %113 : vector<8x128xf32>
    %115 = arith.mulf %108, %114 : vector<8x128xf32>
    %116 = arith.cmpi slt, %c2_i32, %20 : i32
    %cst_49 = arith.constant 0.000000e+00 : f32
    %117 = arith.select %116, %cst_49, %cst_27 : f32
    %118 = vector.broadcast %c2_i32 : i32 to vector<8x1xi32>
    %119 = arith.cmpi slt, %118, %19 : vector<8x1xi32>
    %120 = arith.mulf %12, %115 : vector<8x128xf32>
    %121 = vector.shape_cast %119 : vector<8x1xi1> to vector<8x1xi1>
    %122 = vector.broadcast %121 : vector<8x1xi1> to vector<8x128xi1>
    %123 = vector.broadcast %117 : f32 to vector<8x128xf32>
    %124 = arith.select %122, %120, %123 : vector<8x128xi1>, vector<8x128xf32>
    %125 = arith.maximumf %91, %124 : vector<8x128xf32>
    %c3_i32 = arith.constant 3 : i32
    %c8_i32_50 = arith.constant 8 : i32
    %126 = arith.muli %c3_i32, %c8_i32_50 : i32
    %127 = tpu.assume_multiple %126, 8 : i32
    %128 = arith.index_cast %127 : i32 to index
    %c0_51 = arith.constant 0 : index
    %129 = vector.load %arg15[%128, %c0_51] : memref<64x512xf32, #tpu.memory_space<vmem>>, vector<8x512xf32>
    %130 = arith.truncf %115 : vector<8x128xf32> to vector<8x128xbf16>
    %c0_52 = arith.constant 0 : index
    %c0_53 = arith.constant 0 : index
    %131 = vector.load %arg7[%c0_52, %c0_53] : memref<128x512xbf16, #tpu.memory_space<vmem>>, vector<128x512xbf16>
    %cst_54 = arith.constant dense<0.000000e+00> : vector<8x512xf32>
    %132 = tpu.matmul %130, %131, %cst_54 {dimension_numbers = #tpu.dot_dimension_numbers<[1], [0], [0], [1], [0, 0, 1, 1], [], []>} : vector<8x128xbf16>, vector<128x512xbf16>, vector<8x512xf32> -> vector<8x512xf32>
    %133 = arith.addf %129, %132 : vector<8x512xf32>
    %134 = vector.extract_strided_slice %133 {offsets = [0, 0], sizes = [8, 384], strides = [1, 1]} : vector<8x512xf32> to vector<8x384xf32>
    %135 = arith.negf %134 : vector<8x384xf32>
    %136 = math.exp %135 : vector<8x384xf32>
    %cst_55 = arith.constant 1.000000e+00 : f32
    %137 = vector.broadcast %cst_55 : f32 to vector<8x384xf32>
    %138 = arith.addf %137, %136 : vector<8x384xf32>
    %139 = arith.divf %137, %138 : vector<8x384xf32>
    %140 = vector.extract_strided_slice %139 {offsets = [0, 0], sizes = [8, 128], strides = [1, 1]} : vector<8x384xf32> to vector<8x128xf32>
    %141 = vector.extract_strided_slice %139 {offsets = [0, 128], sizes = [8, 128], strides = [1, 1]} : vector<8x384xf32> to vector<8x128xf32>
    %142 = vector.extract_strided_slice %139 {offsets = [0, 256], sizes = [8, 128], strides = [1, 1]} : vector<8x384xf32> to vector<8x128xf32>
    %143 = vector.extract_strided_slice %133 {offsets = [0, 384], sizes = [8, 128], strides = [1, 1]} : vector<8x512xf32> to vector<8x128xf32>
    %144 = math.tanh %143 : vector<8x128xf32>
    %145 = arith.mulf %141, %113 : vector<8x128xf32>
    %146 = arith.mulf %140, %144 : vector<8x128xf32>
    %147 = arith.addf %145, %146 : vector<8x128xf32>
    %148 = math.tanh %147 : vector<8x128xf32>
    %149 = arith.mulf %142, %148 : vector<8x128xf32>
    %150 = arith.cmpi slt, %c3_i32, %20 : i32
    %cst_56 = arith.constant 0.000000e+00 : f32
    %151 = arith.select %150, %cst_56, %cst_27 : f32
    %152 = vector.broadcast %c3_i32 : i32 to vector<8x1xi32>
    %153 = arith.cmpi slt, %152, %19 : vector<8x1xi32>
    %154 = arith.mulf %12, %149 : vector<8x128xf32>
    %155 = vector.shape_cast %153 : vector<8x1xi1> to vector<8x1xi1>
    %156 = vector.broadcast %155 : vector<8x1xi1> to vector<8x128xi1>
    %157 = vector.broadcast %151 : f32 to vector<8x128xf32>
    %158 = arith.select %156, %154, %157 : vector<8x128xi1>, vector<8x128xf32>
    %159 = arith.maximumf %125, %158 : vector<8x128xf32>
    %c4_i32 = arith.constant 4 : i32
    %c8_i32_57 = arith.constant 8 : i32
    %160 = arith.muli %c4_i32, %c8_i32_57 : i32
    %161 = tpu.assume_multiple %160, 8 : i32
    %162 = arith.index_cast %161 : i32 to index
    %c0_58 = arith.constant 0 : index
    %163 = vector.load %arg15[%162, %c0_58] : memref<64x512xf32, #tpu.memory_space<vmem>>, vector<8x512xf32>
    %164 = arith.truncf %149 : vector<8x128xf32> to vector<8x128xbf16>
    %c0_59 = arith.constant 0 : index
    %c0_60 = arith.constant 0 : index
    %165 = vector.load %arg7[%c0_59, %c0_60] : memref<128x512xbf16, #tpu.memory_space<vmem>>, vector<128x512xbf16>
    %cst_61 = arith.constant dense<0.000000e+00> : vector<8x512xf32>
    %166 = tpu.matmul %164, %165, %cst_61 {dimension_numbers = #tpu.dot_dimension_numbers<[1], [0], [0], [1], [0, 0, 1, 1], [], []>} : vector<8x128xbf16>, vector<128x512xbf16>, vector<8x512xf32> -> vector<8x512xf32>
    %167 = arith.addf %163, %166 : vector<8x512xf32>
    %168 = vector.extract_strided_slice %167 {offsets = [0, 0], sizes = [8, 384], strides = [1, 1]} : vector<8x512xf32> to vector<8x384xf32>
    %169 = arith.negf %168 : vector<8x384xf32>
    %170 = math.exp %169 : vector<8x384xf32>
    %cst_62 = arith.constant 1.000000e+00 : f32
    %171 = vector.broadcast %cst_62 : f32 to vector<8x384xf32>
    %172 = arith.addf %171, %170 : vector<8x384xf32>
    %173 = arith.divf %171, %172 : vector<8x384xf32>
    %174 = vector.extract_strided_slice %173 {offsets = [0, 0], sizes = [8, 128], strides = [1, 1]} : vector<8x384xf32> to vector<8x128xf32>
    %175 = vector.extract_strided_slice %173 {offsets = [0, 128], sizes = [8, 128], strides = [1, 1]} : vector<8x384xf32> to vector<8x128xf32>
    %176 = vector.extract_strided_slice %173 {offsets = [0, 256], sizes = [8, 128], strides = [1, 1]} : vector<8x384xf32> to vector<8x128xf32>
    %177 = vector.extract_strided_slice %167 {offsets = [0, 384], sizes = [8, 128], strides = [1, 1]} : vector<8x512xf32> to vector<8x128xf32>
    %178 = math.tanh %177 : vector<8x128xf32>
    %179 = arith.mulf %175, %147 : vector<8x128xf32>
    %180 = arith.mulf %174, %178 : vector<8x128xf32>
    %181 = arith.addf %179, %180 : vector<8x128xf32>
    %182 = math.tanh %181 : vector<8x128xf32>
    %183 = arith.mulf %176, %182 : vector<8x128xf32>
    %184 = arith.cmpi slt, %c4_i32, %20 : i32
    %cst_63 = arith.constant 0.000000e+00 : f32
    %185 = arith.select %184, %cst_63, %cst_27 : f32
    %186 = vector.broadcast %c4_i32 : i32 to vector<8x1xi32>
    %187 = arith.cmpi slt, %186, %19 : vector<8x1xi32>
    %188 = arith.mulf %12, %183 : vector<8x128xf32>
    %189 = vector.shape_cast %187 : vector<8x1xi1> to vector<8x1xi1>
    %190 = vector.broadcast %189 : vector<8x1xi1> to vector<8x128xi1>
    %191 = vector.broadcast %185 : f32 to vector<8x128xf32>
    %192 = arith.select %190, %188, %191 : vector<8x128xi1>, vector<8x128xf32>
    %193 = arith.maximumf %159, %192 : vector<8x128xf32>
    %c5_i32 = arith.constant 5 : i32
    %c8_i32_64 = arith.constant 8 : i32
    %194 = arith.muli %c5_i32, %c8_i32_64 : i32
    %195 = tpu.assume_multiple %194, 8 : i32
    %196 = arith.index_cast %195 : i32 to index
    %c0_65 = arith.constant 0 : index
    %197 = vector.load %arg15[%196, %c0_65] : memref<64x512xf32, #tpu.memory_space<vmem>>, vector<8x512xf32>
    %198 = arith.truncf %183 : vector<8x128xf32> to vector<8x128xbf16>
    %c0_66 = arith.constant 0 : index
    %c0_67 = arith.constant 0 : index
    %199 = vector.load %arg7[%c0_66, %c0_67] : memref<128x512xbf16, #tpu.memory_space<vmem>>, vector<128x512xbf16>
    %cst_68 = arith.constant dense<0.000000e+00> : vector<8x512xf32>
    %200 = tpu.matmul %198, %199, %cst_68 {dimension_numbers = #tpu.dot_dimension_numbers<[1], [0], [0], [1], [0, 0, 1, 1], [], []>} : vector<8x128xbf16>, vector<128x512xbf16>, vector<8x512xf32> -> vector<8x512xf32>
    %201 = arith.addf %197, %200 : vector<8x512xf32>
    %202 = vector.extract_strided_slice %201 {offsets = [0, 0], sizes = [8, 384], strides = [1, 1]} : vector<8x512xf32> to vector<8x384xf32>
    %203 = arith.negf %202 : vector<8x384xf32>
    %204 = math.exp %203 : vector<8x384xf32>
    %cst_69 = arith.constant 1.000000e+00 : f32
    %205 = vector.broadcast %cst_69 : f32 to vector<8x384xf32>
    %206 = arith.addf %205, %204 : vector<8x384xf32>
    %207 = arith.divf %205, %206 : vector<8x384xf32>
    %208 = vector.extract_strided_slice %207 {offsets = [0, 0], sizes = [8, 128], strides = [1, 1]} : vector<8x384xf32> to vector<8x128xf32>
    %209 = vector.extract_strided_slice %207 {offsets = [0, 128], sizes = [8, 128], strides = [1, 1]} : vector<8x384xf32> to vector<8x128xf32>
    %210 = vector.extract_strided_slice %207 {offsets = [0, 256], sizes = [8, 128], strides = [1, 1]} : vector<8x384xf32> to vector<8x128xf32>
    %211 = vector.extract_strided_slice %201 {offsets = [0, 384], sizes = [8, 128], strides = [1, 1]} : vector<8x512xf32> to vector<8x128xf32>
    %212 = math.tanh %211 : vector<8x128xf32>
    %213 = arith.mulf %209, %181 : vector<8x128xf32>
    %214 = arith.mulf %208, %212 : vector<8x128xf32>
    %215 = arith.addf %213, %214 : vector<8x128xf32>
    %216 = math.tanh %215 : vector<8x128xf32>
    %217 = arith.mulf %210, %216 : vector<8x128xf32>
    %218 = arith.cmpi slt, %c5_i32, %20 : i32
    %cst_70 = arith.constant 0.000000e+00 : f32
    %219 = arith.select %218, %cst_70, %cst_27 : f32
    %220 = vector.broadcast %c5_i32 : i32 to vector<8x1xi32>
    %221 = arith.cmpi slt, %220, %19 : vector<8x1xi32>
    %222 = arith.mulf %12, %217 : vector<8x128xf32>
    %223 = vector.shape_cast %221 : vector<8x1xi1> to vector<8x1xi1>
    %224 = vector.broadcast %223 : vector<8x1xi1> to vector<8x128xi1>
    %225 = vector.broadcast %219 : f32 to vector<8x128xf32>
    %226 = arith.select %224, %222, %225 : vector<8x128xi1>, vector<8x128xf32>
    %227 = arith.maximumf %193, %226 : vector<8x128xf32>
    %c6_i32 = arith.constant 6 : i32
    %c8_i32_71 = arith.constant 8 : i32
    %228 = arith.muli %c6_i32, %c8_i32_71 : i32
    %229 = tpu.assume_multiple %228, 8 : i32
    %230 = arith.index_cast %229 : i32 to index
    %c0_72 = arith.constant 0 : index
    %231 = vector.load %arg15[%230, %c0_72] : memref<64x512xf32, #tpu.memory_space<vmem>>, vector<8x512xf32>
    %232 = arith.truncf %217 : vector<8x128xf32> to vector<8x128xbf16>
    %c0_73 = arith.constant 0 : index
    %c0_74 = arith.constant 0 : index
    %233 = vector.load %arg7[%c0_73, %c0_74] : memref<128x512xbf16, #tpu.memory_space<vmem>>, vector<128x512xbf16>
    %cst_75 = arith.constant dense<0.000000e+00> : vector<8x512xf32>
    %234 = tpu.matmul %232, %233, %cst_75 {dimension_numbers = #tpu.dot_dimension_numbers<[1], [0], [0], [1], [0, 0, 1, 1], [], []>} : vector<8x128xbf16>, vector<128x512xbf16>, vector<8x512xf32> -> vector<8x512xf32>
    %235 = arith.addf %231, %234 : vector<8x512xf32>
    %236 = vector.extract_strided_slice %235 {offsets = [0, 0], sizes = [8, 384], strides = [1, 1]} : vector<8x512xf32> to vector<8x384xf32>
    %237 = arith.negf %236 : vector<8x384xf32>
    %238 = math.exp %237 : vector<8x384xf32>
    %cst_76 = arith.constant 1.000000e+00 : f32
    %239 = vector.broadcast %cst_76 : f32 to vector<8x384xf32>
    %240 = arith.addf %239, %238 : vector<8x384xf32>
    %241 = arith.divf %239, %240 : vector<8x384xf32>
    %242 = vector.extract_strided_slice %241 {offsets = [0, 0], sizes = [8, 128], strides = [1, 1]} : vector<8x384xf32> to vector<8x128xf32>
    %243 = vector.extract_strided_slice %241 {offsets = [0, 128], sizes = [8, 128], strides = [1, 1]} : vector<8x384xf32> to vector<8x128xf32>
    %244 = vector.extract_strided_slice %241 {offsets = [0, 256], sizes = [8, 128], strides = [1, 1]} : vector<8x384xf32> to vector<8x128xf32>
    %245 = vector.extract_strided_slice %235 {offsets = [0, 384], sizes = [8, 128], strides = [1, 1]} : vector<8x512xf32> to vector<8x128xf32>
    %246 = math.tanh %245 : vector<8x128xf32>
    %247 = arith.mulf %243, %215 : vector<8x128xf32>
    %248 = arith.mulf %242, %246 : vector<8x128xf32>
    %249 = arith.addf %247, %248 : vector<8x128xf32>
    %250 = math.tanh %249 : vector<8x128xf32>
    %251 = arith.mulf %244, %250 : vector<8x128xf32>
    %252 = arith.cmpi slt, %c6_i32, %20 : i32
    %cst_77 = arith.constant 0.000000e+00 : f32
    %253 = arith.select %252, %cst_77, %cst_27 : f32
    %254 = vector.broadcast %c6_i32 : i32 to vector<8x1xi32>
    %255 = arith.cmpi slt, %254, %19 : vector<8x1xi32>
    %256 = arith.mulf %12, %251 : vector<8x128xf32>
    %257 = vector.shape_cast %255 : vector<8x1xi1> to vector<8x1xi1>
    %258 = vector.broadcast %257 : vector<8x1xi1> to vector<8x128xi1>
    %259 = vector.broadcast %253 : f32 to vector<8x128xf32>
    %260 = arith.select %258, %256, %259 : vector<8x128xi1>, vector<8x128xf32>
    %261 = arith.maximumf %227, %260 : vector<8x128xf32>
    %c7_i32 = arith.constant 7 : i32
    %c8_i32_78 = arith.constant 8 : i32
    %262 = arith.muli %c7_i32, %c8_i32_78 : i32
    %263 = tpu.assume_multiple %262, 8 : i32
    %264 = arith.index_cast %263 : i32 to index
    %c0_79 = arith.constant 0 : index
    %265 = vector.load %arg15[%264, %c0_79] : memref<64x512xf32, #tpu.memory_space<vmem>>, vector<8x512xf32>
    %266 = arith.truncf %251 : vector<8x128xf32> to vector<8x128xbf16>
    %c0_80 = arith.constant 0 : index
    %c0_81 = arith.constant 0 : index
    %267 = vector.load %arg7[%c0_80, %c0_81] : memref<128x512xbf16, #tpu.memory_space<vmem>>, vector<128x512xbf16>
    %cst_82 = arith.constant dense<0.000000e+00> : vector<8x512xf32>
    %268 = tpu.matmul %266, %267, %cst_82 {dimension_numbers = #tpu.dot_dimension_numbers<[1], [0], [0], [1], [0, 0, 1, 1], [], []>} : vector<8x128xbf16>, vector<128x512xbf16>, vector<8x512xf32> -> vector<8x512xf32>
    %269 = arith.addf %265, %268 : vector<8x512xf32>
    %270 = vector.extract_strided_slice %269 {offsets = [0, 0], sizes = [8, 384], strides = [1, 1]} : vector<8x512xf32> to vector<8x384xf32>
    %271 = arith.negf %270 : vector<8x384xf32>
    %272 = math.exp %271 : vector<8x384xf32>
    %cst_83 = arith.constant 1.000000e+00 : f32
    %273 = vector.broadcast %cst_83 : f32 to vector<8x384xf32>
    %274 = arith.addf %273, %272 : vector<8x384xf32>
    %275 = arith.divf %273, %274 : vector<8x384xf32>
    %276 = vector.extract_strided_slice %275 {offsets = [0, 0], sizes = [8, 128], strides = [1, 1]} : vector<8x384xf32> to vector<8x128xf32>
    %277 = vector.extract_strided_slice %275 {offsets = [0, 128], sizes = [8, 128], strides = [1, 1]} : vector<8x384xf32> to vector<8x128xf32>
    %278 = vector.extract_strided_slice %275 {offsets = [0, 256], sizes = [8, 128], strides = [1, 1]} : vector<8x384xf32> to vector<8x128xf32>
    %279 = vector.extract_strided_slice %269 {offsets = [0, 384], sizes = [8, 128], strides = [1, 1]} : vector<8x512xf32> to vector<8x128xf32>
    %280 = math.tanh %279 : vector<8x128xf32>
    %281 = arith.mulf %277, %249 : vector<8x128xf32>
    %282 = arith.mulf %276, %280 : vector<8x128xf32>
    %283 = arith.addf %281, %282 : vector<8x128xf32>
    %284 = math.tanh %283 : vector<8x128xf32>
    %285 = arith.mulf %278, %284 : vector<8x128xf32>
    %286 = arith.cmpi slt, %c7_i32, %20 : i32
    %cst_84 = arith.constant 0.000000e+00 : f32
    %287 = arith.select %286, %cst_84, %cst_27 : f32
    %288 = vector.broadcast %c7_i32 : i32 to vector<8x1xi32>
    %289 = arith.cmpi slt, %288, %19 : vector<8x1xi32>
    %290 = arith.mulf %12, %285 : vector<8x128xf32>
    %291 = vector.shape_cast %289 : vector<8x1xi1> to vector<8x1xi1>
    %292 = vector.broadcast %291 : vector<8x1xi1> to vector<8x128xi1>
    %293 = vector.broadcast %287 : f32 to vector<8x128xf32>
    %294 = arith.select %292, %290, %293 : vector<8x128xi1>, vector<8x128xf32>
    %295 = arith.maximumf %261, %294 : vector<8x128xf32>
    %c8_i32_85 = arith.constant 8 : i32
    %c0_86 = arith.constant 0 : index
    %c0_87 = arith.constant 0 : index
    %296 = vector.load %arg11[%c0_86, %c0_87] : memref<128x128xbf16, #tpu.memory_space<vmem>>, vector<128x128xbf16>
    %cst_88 = arith.constant dense<0.000000e+00> : vector<8x128xf32>
    %297 = tpu.matmul %5, %296, %cst_88 {dimension_numbers = #tpu.dot_dimension_numbers<[1], [0], [0], [1], [0, 0, 1, 1], [], []>} : vector<8x128xbf16>, vector<128x128xbf16>, vector<8x128xf32> -> vector<8x128xf32>
    %298 = arith.truncf %295 : vector<8x128xf32> to vector<8x128xbf16>
    %c0_89 = arith.constant 0 : index
    %c0_90 = arith.constant 0 : index
    %299 = vector.load %arg12[%c0_89, %c0_90] : memref<128x128xbf16, #tpu.memory_space<vmem>>, vector<128x128xbf16>
    %cst_91 = arith.constant dense<0.000000e+00> : vector<8x128xf32>
    %300 = tpu.matmul %298, %299, %cst_91 {dimension_numbers = #tpu.dot_dimension_numbers<[1], [0], [0], [1], [0, 0, 1, 1], [], []>} : vector<8x128xbf16>, vector<128x128xbf16>, vector<8x128xf32> -> vector<8x128xf32>
    %301 = arith.addf %297, %300 : vector<8x128xf32>
    %302 = arith.mulf %301, %3 : vector<8x128xf32>
    %cst_92 = arith.constant dense<0.000000e+00> : vector<8xf32>
    %303 = vector.multi_reduction <add>, %302, %cst_92 [1] : vector<8x128xf32> to vector<8xf32>
    %304 = vector.shape_cast %303 : vector<8xf32> to vector<8x1xf32>
    %305 = vector.shape_cast %304 : vector<8x1xf32> to vector<8x1xf32>
    %306 = vector.broadcast %305 : vector<8x1xf32> to vector<8x128xf32>
    %c0_93 = arith.constant 0 : index
    %c0_94 = arith.constant 0 : index
    %307 = vector.load %arg13[%c0_93, %c0_94] : memref<8x128xf32, #tpu.memory_space<vmem>>, vector<8x128xf32>
    tpu.vector_store %arg13[%c0_93, %c0_94], %306 {strides = array<i32>} : memref<8x128xf32, #tpu.memory_space<vmem>>, vector<8x128xf32>,
    return
  }
  func.func @transform_0(%arg0: i32, %arg1: memref<160xi32, #tpu.memory_space<smem>>, %arg2: memref<1xi32, #tpu.memory_space<smem>>) -> (i32, i32) {
    %c0_i32 = arith.constant 0 : i32
    %c0_i32_0 = arith.constant 0 : i32
    return %arg0, %c0_i32 : i32, i32
  }
  func.func @transform_2(%arg0: i32, %arg1: memref<160xi32, #tpu.memory_space<smem>>, %arg2: memref<1xi32, #tpu.memory_space<smem>>) -> (i32, i32) {
    %c0_i32 = arith.constant 0 : i32
    %c0_i32_0 = arith.constant 0 : i32
    %c0_i32_1 = arith.constant 0 : i32
    return %c0_i32, %c0_i32_0 : i32, i32
  }
  func.func @transform_3(%arg0: i32, %arg1: memref<160xi32, #tpu.memory_space<smem>>, %arg2: memref<1xi32, #tpu.memory_space<smem>>) -> (i32, i32) {
    %c0_i32 = arith.constant 0 : i32
    %c0_i32_0 = arith.constant 0 : i32
    %c0_i32_1 = arith.constant 0 : i32
    return %c0_i32, %c0_i32_0 : i32, i32
  }
  func.func @transform_4(%arg0: i32, %arg1: memref<160xi32, #tpu.memory_space<smem>>, %arg2: memref<1xi32, #tpu.memory_space<smem>>) -> (i32, i32) {
    %c0_i32 = arith.constant 0 : i32
    %c0_i32_0 = arith.constant 0 : i32
    %c0_i32_1 = arith.constant 0 : i32
    return %c0_i32, %c0_i32_0 : i32, i32
  }
  func.func @transform_5(%arg0: i32, %arg1: memref<160xi32, #tpu.memory_space<smem>>, %arg2: memref<1xi32, #tpu.memory_space<smem>>) -> (i32, i32) {
    %c0_i32 = arith.constant 0 : i32
    %c0_i32_0 = arith.constant 0 : i32
    %c0_i32_1 = arith.constant 0 : i32
    return %c0_i32, %c0_i32_0 : i32, i32
  }
  func.func @transform_6(%arg0: i32, %arg1: memref<160xi32, #tpu.memory_space<smem>>, %arg2: memref<1xi32, #tpu.memory_space<smem>>) -> (i32, i32) {
    %c0_i32 = arith.constant 0 : i32
    %c0_i32_0 = arith.constant 0 : i32
    return %arg0, %c0_i32 : i32, i32
  }
  func.func @transform_7(%arg0: i32, %arg1: memref<160xi32, #tpu.memory_space<smem>>, %arg2: memref<1xi32, #tpu.memory_space<smem>>) -> (i32, i32) {
    %c0_i32 = arith.constant 0 : i32
    %c0_i32_0 = arith.constant 0 : i32
    return %arg0, %c0_i32 : i32, i32
  }
  func.func @transform_8(%arg0: i32, %arg1: memref<160xi32, #tpu.memory_space<smem>>, %arg2: memref<1xi32, #tpu.memory_space<smem>>) -> (i32, i32) {
    %c0_i32 = arith.constant 0 : i32
    %c0_i32_0 = arith.constant 0 : i32
    %c0_i32_1 = arith.constant 0 : i32
    return %c0_i32, %c0_i32_0 : i32, i32
  }
  func.func @transform_9(%arg0: i32, %arg1: memref<160xi32, #tpu.memory_space<smem>>, %arg2: memref<1xi32, #tpu.memory_space<smem>>) -> (i32, i32) {
    %c0_i32 = arith.constant 0 : i32
    %c0_i32_0 = arith.constant 0 : i32
    %c0_i32_1 = arith.constant 0 : i32
    return %c0_i32, %c0_i32_0 : i32, i32
  }
  func.func @transform_10(%arg0: i32, %arg1: memref<160xi32, #tpu.memory_space<smem>>, %arg2: memref<1xi32, #tpu.memory_space<smem>>) -> (i32, i32) {
    %c0_i32 = arith.constant 0 : i32
    %c0_i32_0 = arith.constant 0 : i32
    return %arg0, %c0_i32 : i32, i32
  }
}

</mosaic_0001>

<bundles_post_ra>
// kernel: expan_match_forward.1
= control target key start
LH: loop header
LB: loop body
LE: loop exit
PB: predicated region body
PF: predicated region fallthrough
CT: control target
= control target key end

     0   :  { %s4457_s0 = inlined_call_operand.vmem [shape: s32[160], index: 0, kind: input, shape index: {}]   ;;  %s4458_s1 = inlined_call_operand.<no memory space> [shape: s32[1], index: 1, kind: input, shape index: {}]   ;;  %s4459_s2 = inlined_call_operand.vmem [shape: s32[16,1], index: 2, kind: input, shape index: {}]   ;;  %s4460_s3 = inlined_call_operand.hbm [shape: f32[50,128], index: 3, kind: input, shape index: {}]   ;;  %s4461_s4 = inlined_call_operand.hbm [shape: bf16[128,128], index: 4, kind: input, shape index: {}]   ;;  %s4462_s5 = inlined_call_operand.vmem [shape: bf16[128,512], index: 5, kind: input, shape index: {}]   ;;  %s4463_s6 = inlined_call_operand.hbm [shape: bf16[128,512], index: 6, kind: input, shape index: {}]   ;;  %s4464_s7 = inlined_call_operand.hbm [shape: f32[1,512], index: 7, kind: input, shape index: {}]   ;;  %s4465_s8 = inlined_call_operand.vmem [shape: f32[16,128], index: 8, kind: input, shape index: {}]   ;;  %s4466_s9 = inlined_call_operand.vmem [shape: f32[16,128], index: 9, kind: input, shape index: {}]   ;;  %s4467_s10 = inlined_call_operand.hbm [shape: bf16[128,128], index: 10, kind: input, shape index: {}]   ;;  %s4468_s11 = inlined_call_operand.hbm [shape: bf16[128,128], index: 11, kind: input, shape index: {}]   ;;  %s4469_s12 = inlined_call_operand.vmem [shape: f32[16,128], index: 12, kind: output, shape index: {}]  }
   0x1   :  { %s17_s23 = sshll.u32 %s4457_s0, 4  ;;  %21 = sst [smem:[#allocation7]] %s4458_s1  ;;  %s18_s23 = int_to_ptr.vmem [resolvable:$true] %s17_s23 }
   0x2   :  { %s3181_s26 = scalar_lea.vmem %s18_s23, 32  ;;  %p3186_p1 = scmp.lt.s32.totalorder %s18_s23, %s18_s23 }
   0x3   :  { %p3182_p0 = scmp.ne.s32.totalorder %s18_s23, %s3181_s26  ;;  %p3187_p2 = scmp.lt.s32.totalorder %s3181_s26, %s3181_s26 }
   0x5   :  { %p3188_p3 = por %p3187_p2, %p3186_p1 }
   0x7   :  { %p3189_p4 = pnand %p3188_p3, %p3182_p0 }
   0x9   :  { %3192 = shalt.err (!%p3189_p4)  }
   0xa   :  { %s3397_s27 = smov [#allocation6]  }
   0xb   :  { %20 = dma.vmem_to_smem %s18_s23, 32, %s3397_s27, [#allocation5] }
   0xc   :  { %3369 = dma.done.wait [#allocation5], 32 }
   0xd   :  { %3370 = vsyncadd [#allocation5], 4294967264 }
   0xe   :  { %23 = sfence }
   0xf   :  { %24 = vsyncpa [#allocation9], 0 }
  0x10   :  { %25 = vsyncpa [#allocation11], 0 }
  0x11   :  { %26 = vsyncpa [#allocation14], 0  ;;  %s3482_s0 = smov 0  }
  0x12 LB: > { %s3398_s1 = smov [#allocation10]   ;;  %s3488_s29 = sadd.s32 4294967295, %s3387_s0   ;;  %s3387_s0 = sphi %s3482_s0, %s32_s0  }
  0x13   : > { %s295_s28 = sshll.u32 %s3398_s1, 4  ;;  %p2591_p5 = scmp.ge.s32.totalorder %s3387_s0, 1  ;;  %s3493_s28 = int_to_ptr.vmem [resolvable:$true] %s295_s28 }
  0x14   : > { %p267_p6 = scmp.lt.s32.totalorder %s3387_s0, 3  ;;  %p4470_p7 = scmp.eq.s32.totalorder %s3488_s29, 0 }
  0x15   : > { %s3399_s14 = smov [#allocation13]   ;;  %s3400_s16 = smov [#allocation8]  }
  0x16   : > { %p3495_p8 = pnand %p2591_p5, %p267_p6  ;;  %s319_s15 = sshll.u32 %s3399_s14, 4  ;;  %s3507_s15 = int_to_ptr.vmem [resolvable:$true] %s319_s15 }
  0x17   : > { %s279_s17 = sshll.u32 %s3400_s16, 4  ;;  %s3193_s20 = scalar_lea.hbm %s4463_s6, 4096  ;;  %s3509_s17 = int_to_ptr.vmem [resolvable:$true] %s279_s17 }
  0x18   : > { %s4476_s30 = scalar_select %p3495_p8, 1, 0 }
  0x19   : > { %p2835_p9 = pneg %p3495_p8  ;;  %p3194_p11 = scmp.ne.s32.totalorder %s4463_s6, %s3193_s20 }
  0x1a   : > { %p3200_p1 = scmp.lt.u32.totalorder %s3193_s20, %s4463_s6 }
  0x1b   : > { %p3503_p10 = pnand %p4470_p7, %p2835_p9 }
  0x1d   : > { %p3519_p12 = pneg %p3503_p10 }
  0x1f   : > { %p3196_p13 = pnand %p3519_p12, %p3194_p11 }
  0x21   : > { %p3197_p0 = pneg %p3196_p13 }
  0x23   : > { %p3202_p2 = pnand %p3200_p1, %p3197_p0 }
  0x25   : > { %3205 = shalt.err (!%p3202_p2)
}
  0x26   : > { %s3206_s26 = scalar_lea.vmem %s3493_s28, 4096  ;;  %p3214_p6 = scmp.lt.s32.totalorder %s3493_s28, %s3493_s28 }
  0x27   : > { %p3207_p3 = scmp.ne.s32.totalorder %s3493_s28, %s3206_s26  ;;  %p3215_p9 = scmp.lt.s32.totalorder %s3206_s26, %s3206_s26 }
  0x29   : > { %p3209_p4 = pnand %p3207_p3, %p3519_p12  ;;  %p3216_p11 = por %p3215_p9, %p3214_p6 }
  0x2b   : > { %p3210_p5 = pneg %p3209_p4 }
  0x2d   : > { %p3217_p13 = pnand %p3216_p11, %p3210_p5 }
  0x2f   : > { %3220 = shalt.err (!%p3217_p13)
}
  0x30   : > { %s3401_s27 = smov 256   ;;  %s3402_s1 = smov 16  }
  0x31   : > { %2841 = dma.hbm_to_vmem [thread:$0]  (!%p3503_p10), %s4463_s6, 4096, %s3493_s28, [#allocation11], %s3401_s27, %s3401_s27, %s3402_s1  }
  0x32   : > { %s3221_s20 = scalar_lea.hbm %s4467_s10, 1024 }
  0x33   : > { %p3222_p0 = scmp.ne.s32.totalorder %s4467_s10, %s3221_s20  ;;  %p3228_p3 = scmp.lt.u32.totalorder %s3221_s20, %s4467_s10 }
  0x35   : > { %p3224_p1 = pnand %p3222_p0, %p3519_p12 }
  0x37   : > { %p3225_p2 = pneg %p3224_p1 }
  0x39   : > { %p3230_p4 = pnand %p3228_p3, %p3225_p2 }
  0x3b   : > { %3233 = shalt.err (!%p3230_p4)
}
  0x3c   : > { %s3234_s28 = scalar_lea.vmem %s3507_s15, 1024  ;;  %p3242_p11 = scmp.lt.s32.totalorder %s3507_s15, %s3507_s15 }
  0x3d   : > { %p3235_p5 = scmp.ne.s32.totalorder %s3507_s15, %s3234_s28  ;;  %p3243_p13 = scmp.lt.s32.totalorder %s3234_s28, %s3234_s28 }
  0x3f   : > { %p3237_p6 = pnand %p3235_p5, %p3519_p12  ;;  %p3244_p0 = por %p3243_p13, %p3242_p11 }
  0x41   : > { %p3238_p9 = pneg %p3237_p6 }
  0x43   : > { %p3245_p1 = pnand %p3244_p0, %p3238_p9 }
  0x45   : > { %3248 = shalt.err (!%p3245_p1)
}
  0x46   : > { %s3403_s26 = smov 64   ;;  %s3404_s27 = smov 4  }
  0x47   : > { %2847 = dma.hbm_to_vmem [thread:$0]  (!%p3503_p10), %s4467_s10, 1024, %s3507_s15, [#allocation14], %s3403_s26, %s3403_s26, %s3404_s27  }
  0x48   : > { %s3249_s19 = scalar_lea.hbm %s4461_s4, 1024 }
  0x49   : > { %p3250_p2 = scmp.ne.s32.totalorder %s4461_s4, %s3249_s19  ;;  %p3256_p5 = scmp.lt.u32.totalorder %s3249_s19, %s4461_s4 }
  0x4b   : > { %p3252_p3 = pnand %p3250_p2, %p3519_p12 }
  0x4d   : > { %p3253_p4 = pneg %p3252_p3 }
  0x4f   : > { %p3258_p6 = pnand %p3256_p5, %p3253_p4 }
  0x51   : > { %3261 = shalt.err (!%p3258_p6)
}
  0x52   : > { %s3262_s15 = scalar_lea.vmem %s3509_s17, 1024  ;;  %p3270_p0 = scmp.lt.s32.totalorder %s3509_s17, %s3509_s17 }
  0x53   : > { %p3263_p9 = scmp.ne.s32.totalorder %s3509_s17, %s3262_s15  ;;  %p3271_p1 = scmp.lt.s32.totalorder %s3262_s15, %s3262_s15 }
  0x55   : > { %p3265_p11 = pnand %p3263_p9, %p3519_p12  ;;  %p3272_p2 = por %p3271_p1, %p3270_p0 }
  0x57   : > { %p3266_p13 = pneg %p3265_p11 }
  0x59   : > { %p3273_p3 = pnand %p3272_p2, %p3266_p13 }
  0x5b   : > { %3276 = shalt.err (!%p3273_p3)
}
  0x5c   : > { %2838 = dma.hbm_to_vmem [thread:$0]  (!%p3503_p10), %s4461_s4, 1024, %s3509_s17, [#allocation9], %s3403_s26, %s3403_s26, %s3404_s27  }
  0x5d   : > { %s3405_s1 = smov [#allocation12]   ;;  %s3406_s16 = smov [#allocation15]  }
  0x5e   : > { %s309_s14 = sshll.u32 %s3405_s1, 4  ;;  %s332_s18 = sshll.u32 %s3406_s16, 4  ;;  %s310_s14 = int_to_ptr.vmem [resolvable:$true] %s309_s14  ;;  %s3592_s18 = int_to_ptr.vmem [resolvable:$true] %s332_s18 }
  0x5f   : > { %s3277_s21 = scalar_lea.hbm %s4464_s7, 64 }
  0x60   : > { %p3278_p4 = scmp.ne.s32.totalorder %s4464_s7, %s3277_s21  ;;  %p3284_p9 = scmp.lt.u32.totalorder %s3277_s21, %s4464_s7 }
  0x62   : > { %p3280_p5 = pnand %p3278_p4, %p3519_p12 }
  0x64   : > { %p3281_p6 = pneg %p3280_p5 }
  0x66   : > { %p3286_p11 = pnand %p3284_p9, %p3281_p6 }
  0x68   : > { %3289 = shalt.err (!%p3286_p11)
}
  0x69   : > { %s3290_s25 = scalar_lea.vmem %s310_s14, 64  ;;  %p3298_p2 = scmp.lt.s32.totalorder %s310_s14, %s310_s14 }
  0x6a   : > { %p3291_p13 = scmp.ne.s32.totalorder %s310_s14, %s3290_s25  ;;  %p3299_p3 = scmp.lt.s32.totalorder %s3290_s25, %s3290_s25 }
  0x6c   : > { %p3293_p0 = pnand %p3291_p13, %p3519_p12  ;;  %p3300_p7 = por %p3299_p3, %p3298_p2 }
  0x6e   : > { %p3294_p1 = pneg %p3293_p0 }
  0x70   : > { %p3301_p8 = pnand %p3300_p7, %p3294_p1 }
  0x72   : > { %3304 = shalt.err (!%p3301_p8)
}
  0x73   : > { %2844 = dma.hbm_to_vmem [thread:$0]  (!%p3503_p10), %s4464_s7, 64, %s310_s14, [#allocation11]  }
  0x74   : > { %s3305_s20 = scalar_lea.hbm %s4468_s11, 1024 }
  0x75   : > { %p3306_p4 = scmp.ne.s32.totalorder %s4468_s11, %s3305_s20  ;;  %p3312_p7 = scmp.lt.u32.totalorder %s3305_s20, %s4468_s11 }
  0x77   : > { %p3308_p5 = pnand %p3306_p4, %p3519_p12 }
  0x79   : > { %p3309_p6 = pneg %p3308_p5 }
  0x7b   : > { %p3314_p8 = pnand %p3312_p7, %p3309_p6 }
  0x7d   : > { %3317 = shalt.err (!%p3314_p8)
}
  0x7e   : > { %s3318_s14 = scalar_lea.vmem %s3592_s18, 1024  ;;  %p3326_p0 = scmp.lt.s32.totalorder %s3592_s18, %s3592_s18 }
  0x7f   : > { %p3319_p9 = scmp.ne.s32.totalorder %s3592_s18, %s3318_s14  ;;  %p3327_p1 = scmp.lt.s32.totalorder %s3318_s14, %s3318_s14 }
  0x81   : > { %p3321_p11 = pnand %p3319_p9, %p3519_p12  ;;  %p3328_p2 = por %p3327_p1, %p3326_p0 }
  0x83   : > { %p3322_p13 = pneg %p3321_p11 }
  0x85   : > { %p3329_p3 = pnand %p3328_p2, %p3322_p13 }
  0x87   : > { %3332 = shalt.err (!%p3329_p3)
}
  0x88   : > { %2850 = dma.hbm_to_vmem [thread:$0]  (!%p3503_p10), %s4468_s11, 1024, %s3592_s18, [#allocation14], %s3403_s26, %s3403_s26, %s3404_s27  }
  0x89   : > { %p4479_p4 = scmp.ne.s32.totalorder %s4476_s30, 0 }
  0x8b   : > { %369 = sbr.rel (%p4479_p4) target bundleno = 2761 (0xac9), region = 56 }
  0x92   : > { %p4480_p12 = scmp.eq.s32.totalorder %s3488_s29, 0 }
  0x94   : > { %3372 = dma.done.wait (%p4480_p12), [#allocation9], 1024   ;;  %p4481_p5 = pmov %p4480_p12 }
  0x96   : > { %3374 = vsyncadd (%p4481_p5), [#allocation9], 4294966272  ;;  %p4482_p6 = pmov %p4481_p5 }
  0x97   : > { %p4483_p7 = pmov %p4481_p5 }
  0x98   : > { %3376 = dma.done.wait (%p4482_p6), [#allocation11], 4160  }
  0x99   : > { %3378 = vsyncadd (%p4483_p7), [#allocation11], 4294963136  ;;  %p4484_p8 = pmov %p4481_p5 }
  0x9a   : > { %p4485_p10 = pmov %p4481_p5 }
  0x9b   : > { %3380 = dma.done.wait (%p4484_p8), [#allocation14], 2048  }
  0x9c   : > { %3382 = vsyncadd (%p4485_p10), [#allocation14], 4294965248  ;;  %p427_p9 = scmp.lt.s32.totalorder %s3488_s29, 1  ;;  %s444_s30 = smul.u32 80, %s3488_s29 }
  0x9d   : > { %s3675_s14 = smov 0  }
  0x9e   : > { %s428_s13 = scalar_select %p427_p9, %s3488_s29, 1 }
  0xa0   : > { %s3655_s23 = sshll.u32 %s428_s13, 3 }
  0xa1   : > { %s3661_s18 = scalar_lea.vmem %s4459_s2, %s3655_s23 }
  0xa2 LB: >> { %s451_s17 = sadd.s32 %s3391_s14, %s444_s30  ;;  %s455_s13 = scalar_lea.vmem [#allocation2], %s3391_s14  ;;  %s3391_s14 = sphi %s3675_s14, %s450_s14  }
  0xa3   : >> { %s452_s25 = sld [smem:[#allocation6 + %s451_s17]]  ;;  %s463_s26 = sshll.u32 %s455_s13, 4  ;;  %s464_s26 = int_to_ptr.vmem [resolvable:$true] %s463_s26 }
  0xa4   : >> { %s3335_s15 = scalar_lea.hbm %s4460_s3, 896 }
  0xa9   : >> { %s2608_s27 = sshll.u32 %s452_s25, 4 }
  0xaa   : >> { %s454_s19 = scalar_lea.hbm %s4460_s3, %s2608_s27 }
  0xab   : >> { %s3333_s20 = scalar_lea.hbm %s454_s19, 16  ;;  %p3336_p13 = scmp.lt.u32.totalorder %s454_s19, %s4460_s3 }
  0xac   : >> { %p3334_p11 = scmp.ne.s32.totalorder %s454_s19, %s3333_s20  ;;  %p3337_p0 = scmp.lt.u32.totalorder %s3335_s15, %s3333_s20 }
  0xad   : >> { %p3339_p2 = scmp.lt.u32.totalorder %s3333_s20, %s454_s19 }
  0xae   : >> { %p3338_p1 = por %p3337_p0, %p3336_p13 }
  0xb0   : >> { %p3340_p3 = por %p3339_p2, %p3338_p1 }
  0xb2   : >> { %p3341_p4 = pnand %p3340_p3, %p3334_p11 }
  0xb4   : >> { %3344 = shalt.err (!%p3341_p4)  }
  0xb5   : >> { %s3345_s17 = scalar_lea.vmem %s464_s26, 16  ;;  %s3407_s25 = smov [#allocation2]  }
  0xb6   : >> { %p3346_p12 = scmp.ne.s32.totalorder %s464_s26, %s3345_s17  ;;  %s3347_s13 = sshll.u32 %s3407_s25, 4  ;;  %s3348_s13 = int_to_ptr.vmem [resolvable:$false] %s3347_s13 }
  0xb7   : >> { %s3349_s27 = scalar_lea.vmem %s3348_s13, 1280  ;;  %p3350_p5 = scmp.lt.s32.totalorder %s464_s26, %s3348_s13 }
  0xb8   : >> { %p3351_p6 = scmp.lt.s32.totalorder %s3349_s27, %s3345_s17 }
  0xba   : >> { %p3352_p7 = por %p3351_p6, %p3350_p5 }
  0xbc   : >> { %p3353_p8 = pnand %p3352_p7, %p3346_p12 }
  0xbe   : >> { %3356 = shalt.err (!%p3353_p8)  }
  0xbf   : >> { %466 = dma.hbm_to_vmem [thread:$0]  %s454_s19, 16, %s464_s26, [#allocation4] }
  0xc0   : >> { %s450_s14 = sadd.s32 1, %s3391_s14  }
  0xc1   : >> { %p447_p10 = scmp.ge.s32.totalorder %s450_s14, 80  }
  0xc2   : > { %s3393_s16 = smov (%p447_p10), 0  }
  0xc3   : > { %449 = sbr.rel (!%p447_p10) target bundleno = 162 (0xa2), region = 141 }
  0xca LB: >> { %3383 = dma.done.wait [#allocation4], 16  ;;  %s3395_s16 = sphi %s3393_s16, %s472_s16  }
  0xcb   : >> { %3384 = vsyncadd [#allocation4], 4294967280  ;;  %s472_s16 = sadd.s32 1, %s3395_s16  }
  0xcc   : >> { %p469_p9 = scmp.ge.s32.totalorder %s472_s16, 80  }
  0xcd   : > { %v2900_v0 = vld [vmem:[#allocation8] sm:$0xff] (%p469_p9)   ;;  %v4472_v1 = vmov (%p469_p9), 0.0   ;;  %vm3409_vm0 = vmmov (%p469_p9), 0   ;;  %v2904_v4 = vld [vmem:[#allocation8 + $0x8] sm:$0xff] (%p469_p9)   ;;  %v4474_v7 = vmov (%p469_p9), 0   ;;  %v2908_v8 = vld [vmem:[#allocation8 + $0x10] sm:$0xff] (%p469_p9)   ;;  %s4486_s27 = scalar_lea.vmem (%p469_p9), %s4465_s8, %s3655_s23  ;;  %s4505_s15 = scalar_lea.vmem (%p469_p9), %s4466_s9, %s3655_s23 }
  0xce   : > { %471 = sbr.rel (!%p469_p9) target bundleno = 202 (0xca), region = 152  ;;  %2751 = vmatprep.subr.bf16.mxu0 (%p469_p9), %v4472_v1  ;;  %v2901_v2 = vld [vmem:[%s4462_s5 + $0x4] ss:$16 sps:$4 sm:$0xff] (%p469_p9)   ;;  %v2903_v3 = vld [vmem:[%s4462_s5] ss:$16 sps:$4 sm:$0xff] (%p469_p9)   ;;  %2767 = vmatprep.mubr.msk.bf16.mxu0 (%p469_p9), %vm3409_vm0, %v4472_v1  ;;  %v2912_v12 = vld [vmem:[#allocation8 + $0x18] sm:$0xff] (%p469_p9)   ;;  %s4526_s17 = scalar_lea.vmem (%p469_p9), %s4469_s12, %s3655_s23 }
  0xcf   : > { %2752 = vmatpush3.bf16.msra.mxu0 (%p469_p9), %v2900_v0  ;;  %810 = vmatprep.subr.bf16.mxu1 (%p469_p9), %v2901_v2  ;;  %v2905_v5 = vld [vmem:[%s4462_s5 + $0x24] ss:$16 sps:$4 sm:$0xff] (%p469_p9)   ;;  %v2907_v6 = vld [vmem:[%s4462_s5 + $0x20] ss:$16 sps:$4 sm:$0xff] (%p469_p9)   ;;  %v2920_v18 = vld [vmem:[#allocation8 + $0x28] sm:$0xff] (%p469_p9)   ;;  %s4087_s14 = sld [smem:[#allocation7]] (%p469_p9) }
  0xd0   : > { %2753 = vmatprep.subr.bf16.mxu0 (%p469_p9), %v4472_v1  ;;  %811 = vmatpush1.bf16.msra.mxu1 (%p469_p9), %v2903_v3  ;;  %v2909_v9 = vld [vmem:[%s4462_s5 + $0x44] ss:$16 sps:$4 sm:$0xff] (%p469_p9)   ;;  %v2911_v10 = vld [vmem:[%s4462_s5 + $0x40] ss:$16 sps:$4 sm:$0xff] (%p469_p9)   ;;  %v2928_v23 = vld [vmem:[#allocation8 + $0x38] sm:$0xff] (%p469_p9)  }
  0xd1   : > { %842 = vmatprep.mubr.bf16.mxu1 (%p469_p9), %v4474_v7  ;;  %2898 = vset.pattern.permute.xlu0 (%p469_p9), %v4474_v7  ;;  %v2913_v11 = vld [vmem:[%s4462_s5 + $0x64] ss:$16 sps:$4 sm:$0xff] (%p469_p9)   ;;  %v2915_v13 = vld [vmem:[%s4462_s5 + $0x60] ss:$16 sps:$4 sm:$0xff] (%p469_p9)   ;;  %v480_v26 = vld [vmem:[#allocation2 + $0x18] sm:$0xff] (%p469_p9) }
  0xd2   : > { %2899 = vset.pattern.permute.xlu1 (%p469_p9), %v4474_v7  ;;  %812 = vmatprep.subr.bf16.mxu1 (%p469_p9), %v2905_v5  ;;  %v2917_v14 = vld [vmem:[%s4462_s5 + $0x84] ss:$16 sps:$4 sm:$0xff] (%p469_p9)   ;;  %v2919_v16 = vld [vmem:[%s4462_s5 + $0x80] ss:$16 sps:$4 sm:$0xff] (%p469_p9)   ;;  %v2934_v27 = vld [vmem:[%s4462_s5 + $0xc] ss:$16 sps:$4 sm:$0xff] (%p469_p9)  }
  0xd3   : > { %2754 = vmatpush3.bf16.msra.mxu0 (%p469_p9), %v2904_v4  ;;  %v2916_v15 = vld [vmem:[#allocation8 + $0x20] sm:$0xff] (%p469_p9)   ;;  %v2924_v21 = vld [vmem:[#allocation8 + $0x30] sm:$0xff] (%p469_p9)   ;;  %v2932_v31 = vld [vmem:[%s4462_s5 + $0x8] ss:$16 sps:$4 sm:$0xff] (%p469_p9)  }
  0xd4   : > { %2755 = vmatprep.subr.bf16.mxu0 (%p469_p9), %v4472_v1  ;;  %813 = vmatpush1.bf16.msra.mxu1 (%p469_p9), %v2907_v6  ;;  %v2921_v17 = vld [vmem:[%s4462_s5 + $0xa4] ss:$16 sps:$4 sm:$0xff] (%p469_p9)   ;;  %v2923_v19 = vld [vmem:[%s4462_s5 + $0xa0] ss:$16 sps:$4 sm:$0xff] (%p469_p9)   ;;  %v2940_v32 = vld [vmem:[%s4462_s5 + $0x2c] ss:$16 sps:$4 sm:$0xff] (%p469_p9)  }
  0xd5   : > { %814 = vmatprep.subr.bf16.mxu1 %v2909_v9  ;;  %v2925_v20 = vld [vmem:[%s4462_s5 + $0xc4] ss:$16 sps:$4 sm:$0xff]   ;;  %v2927_v22 = vld [vmem:[%s4462_s5 + $0xc0] ss:$16 sps:$4 sm:$0xff]   ;;  %v2938_v34 = vld [vmem:[%s4462_s5 + $0x28] ss:$16 sps:$4 sm:$0xff]  }
  0xd6   : > { %v2929_v24 = vld [vmem:[%s4462_s5 + $0xe4] ss:$16 sps:$4 sm:$0xff]   ;;  %v2931_v28 = vld [vmem:[%s4462_s5 + $0xe0] ss:$16 sps:$4 sm:$0xff]   ;;  %v2946_v37 = vld [vmem:[%s4462_s5 + $0x4c] ss:$16 sps:$4 sm:$0xff]  }
  0xd7   : > { %2756 = vmatpush3.bf16.msra.mxu0 %v2908_v8  ;;  %v479_v25 = vld [vmem:[#allocation2 + $0x10] sm:$0xff]  ;;  %v481_v38 = vld [vmem:[#allocation2 + $0x20] sm:$0xff]  ;;  %v482_v39 = vld [vmem:[#allocation2 + $0x28] sm:$0xff]  ;;  %p1302_p11 = scmp.gt.s32.totalorder %s4087_s14, 0  ;;  %p1431_p13 = scmp.gt.s32.totalorder %s4087_s14, 1 }
  0xd8   : > { %2757 = vmatprep.subr.bf16.mxu0 %v4472_v1  ;;  %815 = vmatpush1.bf16.msra.mxu1 %v2911_v10  ;;  %v3760_v29 = vpack.c.bf16 %v480_v26, %v479_v25  ;;  %v3762_v30 = vld [vmem:[#allocation10 + $0x4] ss:$16 sps:$4 sm:$0xff]   ;;  %v3770_v33 = vld [vmem:[#allocation10] ss:$16 sps:$4 sm:$0xff]   ;;  %v2944_v41 = vld [vmem:[%s4462_s5 + $0x48] ss:$16 sps:$4 sm:$0xff]   ;;  %v3794_v42 = vpack.c.bf16 %v482_v39, %v481_v38 }
  0xd9   : > { %816 = vmatprep.subr.bf16.mxu1 %v2913_v11  ;;  %v3777_v35 = vld [vmem:[#allocation10 + $0x24] ss:$16 sps:$4 sm:$0xff]   ;;  %v3779_v36 = vld [vmem:[#allocation10 + $0x20] ss:$16 sps:$4 sm:$0xff]   ;;  %v2952_v43 = vld [vmem:[%s4462_s5 + $0x6c] ss:$16 sps:$4 sm:$0xff]  }
  0xda   : > { %v3789_v40 = vld [vmem:[#allocation10 + $0x44] ss:$16 sps:$4 sm:$0xff]   ;;  %v3800_v44 = vld [vmem:[#allocation10 + $0x40] ss:$16 sps:$4 sm:$0xff]   ;;  %v2950_v46 = vld [vmem:[%s4462_s5 + $0x68] ss:$16 sps:$4 sm:$0xff]  }
  0xdb   : > { %2758 = vmatpush3.bf16.msra.mxu0 %v2912_v12  ;;  %v3803_v45 = vld [vmem:[#allocation10 + $0x64] ss:$16 sps:$4 sm:$0xff]   ;;  %v3808_v47 = vld [vmem:[#allocation10 + $0x60] ss:$16 sps:$4 sm:$0xff]   ;;  %v2958_v48 = vld [vmem:[%s4462_s5 + $0x8c] ss:$16 sps:$4 sm:$0xff]  }
  0xdc   : > { %2759 = vmatprep.subr.bf16.mxu0 %v4472_v1  ;;  %817 = vmatpush1.bf16.msra.mxu1 %v2915_v13  ;;  %v483_v49 = vld [vmem:[#allocation2 + $0x30] sm:$0xff]  ;;  %v484_v50 = vld [vmem:[#allocation2 + $0x38] sm:$0xff]  ;;  %v485_v60 = vld [vmem:[#allocation2 + $0x40] sm:$0xff]  ;;  %s1303_s29 = scalar_select %p1302_p11, 0.0, -inf }
  0xdd   : > { %818 = vmatprep.subr.bf16.mxu1 %v2917_v14  ;;  %v3817_v51 = vld [vmem:[#allocation10 + $0x84] ss:$16 sps:$4 sm:$0xff]   ;;  %v2956_v52 = vld [vmem:[%s4462_s5 + $0x88] ss:$16 sps:$4 sm:$0xff]   ;;  %v3822_v53 = vpack.c.bf16 %v484_v50, %v483_v49  ;;  %v2964_v54 = vld [vmem:[%s4462_s5 + $0xac] ss:$16 sps:$4 sm:$0xff]  }
  0xde   : > { %v3828_v55 = vld [vmem:[#allocation10 + $0x80] ss:$16 sps:$4 sm:$0xff]   ;;  %v2962_v56 = vld [vmem:[%s4462_s5 + $0xa8] ss:$16 sps:$4 sm:$0xff]   ;;  %v3834_v57 = vld [vmem:[#allocation10 + $0xa4] ss:$16 sps:$4 sm:$0xff]  }
  0xdf   : > { %2760 = vmatpush3.bf16.msra.mxu0 %v2916_v15  ;;  %v3836_v58 = vld [vmem:[#allocation10 + $0xa0] ss:$16 sps:$4 sm:$0xff]   ;;  %v2970_v59 = vld [vmem:[%s4462_s5 + $0xcc] ss:$16 sps:$4 sm:$0xff]   ;;  %v2968_v61 = vld [vmem:[%s4462_s5 + $0xc8] ss:$16 sps:$4 sm:$0xff]  }
  0xe0   : > { %2761 = vmatprep.subr.bf16.mxu0 %v4472_v1  ;;  %819 = vmatpush1.bf16.msra.mxu1 %v2919_v16  ;;  %v486_v62 = vld [vmem:[#allocation2 + $0x48] sm:$0xff]  ;;  %v3848_v63 = vld [vmem:[#allocation10 + $0xc4] ss:$16 sps:$4 sm:$0xff]   ;;  %v3856_v3 = vld [vmem:[#allocation10 + $0xc0] ss:$16 sps:$4 sm:$0xff]   ;;  %p1561_p0 = scmp.gt.s32.totalorder %s4087_s14, 2 }
  0xe1   : > { %820 = vmatprep.subr.bf16.mxu1 %v2921_v17  ;;  %v2976_v0 = vld [vmem:[%s4462_s5 + $0xec] ss:$16 sps:$4 sm:$0xff]   ;;  %v3854_v2 = vld [vmem:[%s3661_s18] sm:$0xff]  ;;  %v3859_v4 = vpack.c.bf16 %v486_v62, %v485_v60  ;;  %v2974_v8 = vld [vmem:[%s4462_s5 + $0xe8] ss:$16 sps:$4 sm:$0xff]   ;;  %p1691_p1 = scmp.gt.s32.totalorder %s4087_s14, 3 }
  0xe2   : > { %vm1304_vm1 = vcmp.gt.s32.totalorder %v3854_v2, 0  ;;  %v3861_v5 = vld [vmem:[#allocation10 + $0xe4] ss:$16 sps:$4 sm:$0xff]   ;;  %v3869_v9 = vld [vmem:[#allocation10 + $0xc] ss:$16 sps:$4 sm:$0xff]   ;;  %vm1433_vm2 = vcmp.gt.s32.totalorder %v3854_v2, 1 }
  0xe3   : > { %2762 = vmatpush3.bf16.msra.mxu0 %v2920_v18  ;;  %v1306_v6 = vsel %vm1304_vm1, 1, %v4474_v7  ;;  %v3871_v10 = vld [vmem:[#allocation10 + $0xe0] ss:$16 sps:$4 sm:$0xff]   ;;  %v3881_v12 = vld [vmem:[#allocation10 + $0x8] ss:$16 sps:$4 sm:$0xff]   ;;  %vm1563_vm3 = vcmp.gt.s32.totalorder %v3854_v2, 2 }
  0xe4   : > { %2763 = vmatprep.subr.bf16.mxu0 %v4472_v1  ;;  %821 = vmatpush1.bf16.msra.mxu1 %v2923_v19  ;;  %v990_v11 = vld [vmem:[%s4486_s27] sm:$0xff]  ;;  %v3884_v13 = vld [vmem:[#allocation10 + $0x2c] ss:$16 sps:$4 sm:$0xff]   ;;  %v3891_v15 = vld [vmem:[#allocation10 + $0x28] ss:$16 sps:$4 sm:$0xff]   ;;  %vm1693_vm6 = vcmp.gt.s32.totalorder %v3854_v2, 3 }
  0xe5   : > { %822 = vmatprep.subr.bf16.mxu1 %v2925_v20  ;;  %1308 = vperm.xlu0 %2898, %v1306_v6   ;;  %v999_v14 = vpack.c.bf16 %v990_v11, %v990_v11  ;;  %v3895_v16 = vld [vmem:[#allocation10 + $0x4c] ss:$16 sps:$4 sm:$0xff]   ;;  %v3901_v17 = vld [vmem:[#allocation10 + $0x48] ss:$16 sps:$4 sm:$0xff]   ;;  %s1432_s30 = scalar_select %p1431_p13, 0.0, -inf }
  0xe6   : > { %v3904_v18 = vld [vmem:[#allocation10 + $0x6c] ss:$16 sps:$4 sm:$0xff]   ;;  %v3910_v19 = vld [vmem:[#allocation10 + $0x68] ss:$16 sps:$4 sm:$0xff]   ;;  %s1562_s26 = scalar_select %p1561_p0, 0.0, -inf }
  0xe7   : > { %2764 = vmatpush3.bf16.msra.mxu0 %v2924_v21  ;;  %v3914_v20 = vld [vmem:[#allocation10 + $0x8c] ss:$16 sps:$4 sm:$0xff]   ;;  %v3919_v21 = vld [vmem:[#allocation10 + $0x88] ss:$16 sps:$4 sm:$0xff]   ;;  %vm1823_vm8 = vcmp.gt.s32.totalorder %v3854_v2, 4  ;;  %p1821_p2 = scmp.gt.s32.totalorder %s4087_s14, 4 }
  0xe8   : > { %2765 = vmatprep.subr.bf16.mxu0 %v4472_v1  ;;  %823 = vmatpush1.bf16.msra.mxu1 %v2927_v22  ;;  %v3922_v22 = vld [vmem:[#allocation10 + $0xac] ss:$16 sps:$4 sm:$0xff]   ;;  %v3937_v25 = vld [vmem:[#allocation10 + $0xc8] ss:$16 sps:$4 sm:$0xff]   ;;  %s1692_s28 = scalar_select %p1691_p1, 0.0, -inf }
  0xe9   : > { %824 = vmatprep.subr.bf16.mxu1 %v2929_v24  ;;  %v3932_v24 = vld [vmem:[#allocation10 + $0xcc] ss:$16 sps:$4 sm:$0xff]   ;;  %p1951_p3 = scmp.gt.s32.totalorder %s4087_s14, 5  ;;  %p2081_p4 = scmp.gt.s32.totalorder %s4087_s14, 6 }
  0xea   : > { %v3940_v26 = vld [vmem:[#allocation10 + $0xec] ss:$16 sps:$4 sm:$0xff]   ;;  %p2211_p12 = scmp.gt.s32.totalorder %s4087_s14, 7 }
  0xeb   : > { %2766 = vmatpush3.bf16.msra.mxu0 %v2928_v23  ;;  %v3928_v23 = vld [vmem:[#allocation10 + $0xa8] ss:$16 sps:$4 sm:$0xff]   ;;  %s1952_s1 = scalar_select %p1951_p3, 0.0, -inf }
  0xec   : > { %883 = vmatprep.subr.bf16.mxu0 %v2934_v27  ;;  %825 = vmatpush1.bf16.msra.mxu1 %v2931_v28  ;;  %v3946_v27 = vld [vmem:[#allocation10 + $0xe8] ss:$16 sps:$4 sm:$0xff]   ;;  %v1435_v28 = vsel %vm1433_vm2, 1, %v4474_v7  ;;  %s2082_s19 = scalar_select %p2081_p4, 0.0, -inf }
  0xed   : > { %1192 = vmatprep.subr.bf16.mxu1 %v3762_v30  ;;  %1437 = vperm.xlu0 %2898, %v1435_v28   ;;  %s2212_s20 = scalar_select %p2211_p12, 0.0, -inf }
  0xee   : > { %2768 = vmatmul.mubr.bf16.vlgmr.msra.gmra.mrb[0].mxu0 %v3760_v29 }
  0xef   : > { %884 = vmatpush1.bf16.msra.mxu0 %v2932_v31  ;;  %915 = vmatprep.mubr.bf16.mxu0 %v4474_v7 }
  0xf0   : > { %843 = vmatmul.mubr.bf16.vlgmr.msra.gmra.mrb[0].mxu1 %v3760_v29  ;;  %885 = vmatprep.subr.bf16.mxu0 %v2940_v32 }
  0xf1   : > { %1193 = vmatpush1.bf16.msra.mxu1 %v3770_v33  ;;  %852 = vmatprep.mubr.bf16.mxu1 %v4474_v7 }
  0xf2   : > { %1194 = vmatprep.subr.bf16.mxu1 %v3777_v35 }
  0xf3   : > { %886 = vmatpush1.bf16.msra.mxu0 %v2938_v34  ;;  %v628_v34 = vld [vmem:[#allocation12] sm:$0xf] }
  0xf4   : > { %887 = vmatprep.subr.bf16.mxu0 %v2946_v37 }
  0xf5   : > { %1195 = vmatpush1.bf16.msra.mxu1 %v3779_v36 }
  0xf6   : > { %1196 = vmatprep.subr.bf16.mxu1 %v3789_v40 }
  0xf7   : > { %888 = vmatpush1.bf16.msra.mxu0 %v2944_v41 }
  0xf8   : > { %853 = vmatmul.mubr.bf16.gmra.mrb[4].mxu1 %v3794_v42  ;;  %889 = vmatprep.subr.bf16.mxu0 %v2952_v43 }
  0xf9   : > { %1197 = vmatpush1.bf16.msra.mxu1 %v3800_v44  ;;  %862 = vmatprep.mubr.bf16.mxu1 %v4474_v7 }
  0xfa   : > { %1198 = vmatprep.subr.bf16.mxu1 %v3803_v45 }
  0xfb   : > { %890 = vmatpush1.bf16.msra.mxu0 %v2950_v46 }
  0xfc   : > { %891 = vmatprep.subr.bf16.mxu0 %v2958_v48 }
  0xfd   : > { %1199 = vmatpush1.bf16.msra.mxu1 %v3808_v47 }
  0xfe   : > { %1200 = vmatprep.subr.bf16.mxu1 %v3817_v51 }
  0xff   : > { %892 = vmatpush1.bf16.msra.mxu0 %v2956_v52 }
 0x100   : > { %863 = vmatmul.mubr.bf16.gmra.mrb[8].mxu1 %v3822_v53  ;;  %893 = vmatprep.subr.bf16.mxu0 %v2964_v54 }
 0x101   : > { %1201 = vmatpush1.bf16.msra.mxu1 %v3828_v55  ;;  %872 = vmatprep.mubr.bf16.mxu1 %v4474_v7 }
 0x102   : > { %1202 = vmatprep.subr.bf16.mxu1 %v3834_v57 }
 0x103   : > { %894 = vmatpush1.bf16.msra.mxu0 %v2962_v56 }
 0x104   : > { %895 = vmatprep.subr.bf16.mxu0 %v2970_v59 }
 0x105   : > { %1203 = vmatpush1.bf16.msra.mxu1 %v3836_v58 }
 0x106   : > { %1204 = vmatprep.subr.bf16.mxu1 %v3848_v63 }
 0x107   : > { %896 = vmatpush1.bf16.msra.mxu0 %v2968_v61 }
 0x108   : > { %873 = vmatmul.mubr.bf16.gmra.mrb[12].mxu1 %v3859_v4  ;;  %897 = vmatprep.subr.bf16.mxu0 %v2976_v0 }
 0x109   : > { %1205 = vmatpush1.bf16.msra.mxu1 %v3856_v3  ;;  %1224 = vmatprep.mubr.bf16.mxu1 %v4474_v7 }
 0x10a   : > { %1206 = vmatprep.subr.bf16.mxu1 %v3861_v5 }
 0x10b   : > { %898 = vmatpush1.bf16.msra.mxu0 %v2974_v8 }
 0x10c   : > { %1233 = vmatprep.subr.bf16.mxu0 %v3869_v9 }
 0x10d   : > { %1207 = vmatpush1.bf16.msra.mxu1 %v3871_v10 }
 0x10e   : > { %916 = vmatmul.mubr.bf16.vlgmr.msra.gmra.mrb[4].mxu0 %v3760_v29  ;;  %1321 = vmatprep.subr.bf16.mxu1 %v3762_v30  ;;  %v630_v29 = vlaneseq }
 0x10f   : > { %1234 = vmatpush1.bf16.msra.mxu0 %v3881_v12  ;;  %925 = vmatprep.mubr.bf16.mxu0 %v4474_v7 }
 0x110   : > { %1225 = vmatmul.mubr.bf16.vlgmr.msra.gmra.mrb[16].mxu1 %v999_v14  ;;  %1235 = vmatprep.subr.bf16.mxu0 %v3884_v13  ;;  %v631_v31 = vshrl.u32 %v630_v29, 7 }
 0x111   : > { %1322 = vmatpush1.bf16.msra.mxu1 %v3770_v33  ;;  %1353 = vmatprep.mubr.bf16.mxu1 %v4474_v7 }
 0x112   : > { %1323 = vmatprep.subr.bf16.mxu1 %v3777_v35  ;;  %v632_v32 = vsub.s32 0, %v631_v31  ;;  %v636_v37 = vsub.s32 1, %v631_v31 }
 0x113   : > { %1236 = vmatpush1.bf16.msra.mxu0 %v3891_v15 }
 0x114   : > { %1237 = vmatprep.subr.bf16.mxu0 %v3895_v16  ;;  %v633_v41 = vrot.slane %v628_v34, %v632_v32  ;;  %v637_v46 = vrot.slane %v628_v34, %v636_v37 }
 0x115   : > { %1324 = vmatpush1.bf16.msra.mxu1 %v3779_v36 }
 0x116   : > { %926 = vmatmul.mubr.bf16.gmra.mrb[8].mxu0 %v3794_v42  ;;  %1325 = vmatprep.subr.bf16.mxu1 %v3789_v40 }
 0x117   : > { %1238 = vmatpush1.bf16.msra.mxu0 %v3901_v17  ;;  %935 = vmatprep.mubr.bf16.mxu0 %v4474_v7 }
 0x118   : > { %1239 = vmatprep.subr.bf16.mxu0 %v3904_v18 }
 0x119   : > { %1326 = vmatpush1.bf16.msra.mxu1 %v3800_v44 }
 0x11a   : > { %1327 = vmatprep.subr.bf16.mxu1 %v3803_v45 }
 0x11b   : > { %1240 = vmatpush1.bf16.msra.mxu0 %v3910_v19 }
 0x11c   : > { %1241 = vmatprep.subr.bf16.mxu0 %v3914_v20 }
 0x11d   : > { %1328 = vmatpush1.bf16.msra.mxu1 %v3808_v47 }
 0x11e   : > { %936 = vmatmul.mubr.bf16.gmra.mrb[12].mxu0 %v3822_v53  ;;  %1329 = vmatprep.subr.bf16.mxu1 %v3817_v51 }
 0x11f   : > { %1242 = vmatpush1.bf16.msra.mxu0 %v3919_v21  ;;  %945 = vmatprep.mubr.bf16.mxu0 %v4474_v7 }
 0x120   : > { %1243 = vmatprep.subr.bf16.mxu0 %v3922_v22 }
 0x121   : > { %1330 = vmatpush1.bf16.msra.mxu1 %v3828_v55 }
 0x122   : > { %1331 = vmatprep.subr.bf16.mxu1 %v3834_v57 }
 0x123   : > { %1244 = vmatpush1.bf16.msra.mxu0 %v3928_v23 }
 0x124   : > { %1245 = vmatprep.subr.bf16.mxu0 %v3932_v24 }
 0x125   : > { %1332 = vmatpush1.bf16.msra.mxu1 %v3836_v58 }
 0x126   : > { %946 = vmatmul.mubr.bf16.gmra.mrb[16].mxu0 %v3859_v4  ;;  %1333 = vmatprep.subr.bf16.mxu1 %v3848_v63 }
 0x127   : > { %1246 = vmatpush1.bf16.msra.mxu0 %v3937_v25  ;;  %1265 = vmatprep.mubr.bf16.mxu0 %v4474_v7 }
 0x128   : > { %1247 = vmatprep.subr.bf16.mxu0 %v3940_v26 }
 0x129   : > { %1334 = vmatpush1.bf16.msra.mxu1 %v3856_v3 }
 0x12a   : > { %1335 = vmatprep.subr.bf16.mxu1 %v3861_v5 }
 0x12b   : > { %1248 = vmatpush1.bf16.msra.mxu0 %v3946_v27 }
 0x12c   : > { %1362 = vmatprep.subr.bf16.mxu0 %v3869_v9 }
 0x12d   : > { %1336 = vmatpush1.bf16.msra.mxu1 %v3871_v10 }
 0x12e   : > { %1266 = vmatmul.mubr.bf16.vlgmr.msra.gmra.mrb[20].mxu0 %v999_v14  ;;  %1451 = vmatprep.subr.bf16.mxu1 %v3762_v30 }
 0x12f   : > { %1363 = vmatpush1.bf16.msra.mxu0 %v3881_v12  ;;  %1394 = vmatprep.mubr.bf16.mxu0 %v4474_v7 }
 0x130   : > { %1364 = vmatprep.subr.bf16.mxu0 %v3884_v13 }
 0x133   : > { %1365 = vmatpush1.bf16.msra.mxu0 %v3891_v15 }
 0x134   : > { %1366 = vmatprep.subr.bf16.mxu0 %v3895_v16 }
 0x137   : > { %1367 = vmatpush1.bf16.msra.mxu0 %v3901_v17 }
 0x138   : > { %1368 = vmatprep.subr.bf16.mxu0 %v3904_v18 }
 0x13b   : > { %1369 = vmatpush1.bf16.msra.mxu0 %v3910_v19 }
 0x13c   : > { %1370 = vmatprep.subr.bf16.mxu0 %v3914_v20 }
 0x13f   : > { %1371 = vmatpush1.bf16.msra.mxu0 %v3919_v21 }
 0x140   : > { %1372 = vmatprep.subr.bf16.mxu0 %v3922_v22 }
 0x143   : > { %1373 = vmatpush1.bf16.msra.mxu0 %v3928_v23 }
 0x144   : > { %1374 = vmatprep.subr.bf16.mxu0 %v3932_v24 }
 0x147   : > { %1375 = vmatpush1.bf16.msra.mxu0 %v3937_v25 }
 0x148   : > { %1376 = vmatprep.subr.bf16.mxu0 %v3940_v26 }
 0x14b   : > { %1377 = vmatpush1.bf16.msra.mxu0 %v3946_v27 }
 0x14c   : > { %1492 = vmatprep.subr.bf16.mxu0 %v3869_v9 }
 0x1c1   : > { %v3975_v38 = vpop.f32.mrb[0].mxu0 }
 0x1c2   : > { %v2769_v39 = vpop.f32.mrb[1].mxu0 }
 0x1c3   : > { %v592_v42 = vpop.f32.mrb[2].mxu0  ;;  %v844_v43 = vpop.f32.mrb[0].mxu1 }
 0x1c4   : > { %v2770_v48 = vpop.f32.mrb[3].mxu0  ;;  %v846_v49 = vpop.f32.mrb[1].mxu1 }
 0x1c5   : > { %v848_v50 = vpop.f32.mrb[2].mxu1 }
 0x1c6   : > { %v3977_v52 = vadd.f32 %v848_v50, %v633_v41  ;;  %v850_v53 = vpop.f32.mrb[3].mxu1 }
 0x1c7   : > { %v3979_v54 = vadd.f32 %v850_v53, %v637_v46 }
 0x1cb   : > { %v854_v56 = vpop.f32.mrb[4].mxu1 }
 0x1cc   : > { %v3981_v59 = vadd.f32 %v854_v56, %v633_v41  ;;  %v856_v60 = vpop.f32.mrb[5].mxu1 }
 0x1cd   : > { %v3983_v61 = vadd.f32 %v856_v60, %v637_v46  ;;  %v858_v62 = vpop.f32.mrb[6].mxu1 }
 0x1ce   : > { %v3985_v0 = vadd.f32 %v858_v62, %v633_v41  ;;  %v860_v4 = vpop.f32.mrb[7].mxu1 }
 0x1cf   : > { %v3987_v6 = vadd.f32 %v860_v4, %v637_v46  ;;  %v640_v4 = vsub.s32 2, %v631_v31 }
 0x1d1   : > { %4487 = vst [vmem:[#allocation25_spill] sm:$0xff] %v3987_v6  ;;  %v641_v7 = vrot.slane %v628_v34, %v640_v4 }
 0x1d3   : > { %v864_v8 = vpop.f32.mrb[8].mxu1 }
 0x1d4   : > { %v3989_v11 = vadd.f32 %v864_v8, %v633_v41  ;;  %v866_v14 = vpop.f32.mrb[9].mxu1 }
 0x1d5   : > { %v3991_v28 = vadd.f32 %v866_v14, %v637_v46  ;;  %v868_v29 = vpop.f32.mrb[10].mxu1  ;;  %v644_v14 = vsub.s32 3, %v631_v31 }
 0x1d6   : > { %4488 = vst [vmem:[#allocation26_spill] sm:$0xff] %v3989_v11  ;;  %v3993_v32 = vadd.f32 %v868_v29, %v633_v41  ;;  %v870_v37 = vpop.f32.mrb[11].mxu1  ;;  %v845_v29 = vadd.f32 %v844_v43, %v633_v41 }
 0x1d7   : > { %4489 = vst [vmem:[#allocation27_spill] sm:$0xff] %v3991_v28  ;;  %v3995_v39 = vadd.f32 %v870_v37, %v637_v46  ;;  %v847_v37 = vadd.f32 %v846_v49, %v637_v46 }
 0x1d8   : > { %4490 = vst [vmem:[#allocation28_spill] sm:$0xff] %v3993_v32 }
 0x1d9   : > { %4491 = vst [vmem:[#allocation29_spill] sm:$0xff] %v3995_v39  ;;  %v645_v39 = vrot.slane %v628_v34, %v644_v14 }
 0x1db   : > { %v874_v42 = vpop.f32.mrb[12].mxu1 }
 0x1dc   : > { %v3997_v48 = vadd.f32 %v874_v42, %v633_v41  ;;  %v876_v50 = vpop.f32.mrb[13].mxu1 }
 0x1dd   : > { %v3999_v53 = vadd.f32 %v876_v50, %v637_v46  ;;  %v878_v56 = vpop.f32.mrb[14].mxu1 }
 0x1de   : > { %4492 = vst [vmem:[#allocation30_spill] sm:$0xff] %v3997_v48  ;;  %v4001_v60 = vadd.f32 %v878_v56, %v633_v41  ;;  %v880_v62 = vpop.f32.mrb[15].mxu1 }
 0x1df   : > { %4493 = vst [vmem:[#allocation31_spill] sm:$0xff] %v3999_v53  ;;  %v4003_v8 = vadd.f32 %v880_v62, %v637_v46 }
 0x1e0   : > { %4494 = vst [vmem:[#allocation32_spill] sm:$0xff] %v4001_v60 }
 0x1e1   : > { %4495 = vst [vmem:[#allocation33_spill] sm:$0xff] %v4003_v8  ;;  %v917_v1 = vpop.f32.mrb[4].mxu0 }
 0x1e2   : > { %v919_v32 = vpop.f32.mrb[5].mxu0 }
 0x1e3   : > { %v1226_v28 = vpop.f32.mrb[16].mxu1  ;;  %v921_v42 = vpop.f32.mrb[6].mxu0 }
 0x1e4   : > { %v1274_v48 = vadd.f32 %v1226_v28, %v845_v29  ;;  %v4005_v11 = vadd.f32 %v921_v42, %v641_v7  ;;  %v1228_v50 = vpop.f32.mrb[17].mxu1  ;;  %v923_v53 = vpop.f32.mrb[7].mxu0 }
 0x1e5   : > { %v1275_v56 = vadd.f32 %v1228_v50, %v847_v37  ;;  %v4007_v60 = vadd.f32 %v923_v53, %v645_v39  ;;  %v1230_v6 = vpop.f32.mrb[18].mxu1 }
 0x1e6   : > { %v1231_v62 = vpop.f32.mrb[19].mxu1  ;;  %v2681_v14 = vmul.f32 -1.442695, %v1274_v48 }
 0x1e7   : > { %v2682_v4 = vmul.f32 -1.442695, %v1275_v56 }
 0x1e9   : > { %v927_v8 = vpop.f32.mrb[8].mxu0  ;;  %3020 = vpow2.f32 %v2682_v4 }
 0x1ea   : > { %v4009_v31 = vadd.f32 %v927_v8, %v641_v7  ;;  %v929_v41 = vpop.f32.mrb[9].mxu0  ;;  %3022 = vpow2.f32 %v2681_v14 }
 0x1eb   : > { %v4011_v43 = vadd.f32 %v929_v41, %v645_v39  ;;  %v931_v46 = vpop.f32.mrb[10].mxu0 }
 0x1ec   : > { %v4013_v34 = vadd.f32 %v931_v46, %v641_v7  ;;  %v933_v49 = vpop.f32.mrb[11].mxu0 }
 0x1ed   : > { %v4015_v28 = vadd.f32 %v933_v49, %v645_v39 }
 0x1ee   : > { %4496 = vst [vmem:[#allocation34_spill] sm:$0xff] %v4013_v34 }
 0x1ef   : > { %4497 = vst [vmem:[#allocation35_spill] sm:$0xff] %v4015_v28 }
 0x1f1   : > { %v937_v29 = vpop.f32.mrb[12].mxu0 }
 0x1f2   : > { %v4017_v53 = vadd.f32 %v937_v29, %v641_v7  ;;  %v939_v6 = vpop.f32.mrb[13].mxu0 }
 0x1f3   : > { %v4019_v37 = vadd.f32 %v939_v6, %v645_v39  ;;  %v941_v8 = vpop.f32.mrb[14].mxu0  ;;  %v3021_v4 = vpop.eup %3020 }
 0x1f4   : > { %4498 = vst [vmem:[#allocation36_spill] sm:$0xff] %v4017_v53  ;;  %v4021_v42 = vadd.f32 %v941_v8, %v641_v7  ;;  %v943_v50 = vpop.f32.mrb[15].mxu0  ;;  %v3023_v14 = vpop.eup %3022  ;;  %v918_v8 = vadd.f32 %v917_v1, %v641_v7 }
 0x1f5   : > { %4499 = vst [vmem:[#allocation37_spill] sm:$0xff] %v4019_v37  ;;  %v4023_v62 = vadd.f32 %v943_v50, %v645_v39  ;;  %v1288_v37 = vadd.f32 1.0, %v3021_v4  ;;  %v920_v50 = vadd.f32 %v919_v32, %v645_v39 }
 0x1f6   : > { %4500 = vst [vmem:[#allocation38_spill] sm:$0xff] %v4021_v42  ;;  %v1287_v42 = vadd.f32 1.0, %v3023_v14 }
 0x1f7   : > { %4501 = vst [vmem:[#allocation39_spill] sm:$0xff] %v4023_v62  ;;  %3024 = vrcp.f32 %v1288_v37 }
 0x1f8   : > { %3026 = vrcp.f32 %v1287_v42  ;;  %v4042_v42 = vmax.f32 %v3975_v38, 0.0 }
 0x1f9   : > { %v947_v41 = vpop.f32.mrb[16].mxu0 }
 0x1fa   : > { %v4025_v46 = vadd.f32 %v947_v41, %v641_v7  ;;  %v949_v49 = vpop.f32.mrb[17].mxu0 }
 0x1fb   : > { %v4027_v56 = vadd.f32 %v949_v49, %v645_v39  ;;  %v951_v48 = vpop.f32.mrb[18].mxu0 }
 0x1fc   : > { %4502 = vst [vmem:[#allocation40_spill] sm:$0xff] %v4025_v46  ;;  %v4029_v29 = vadd.f32 %v951_v48, %v641_v7  ;;  %v953_v53 = vpop.f32.mrb[19].mxu0 }
 0x1fd   : > { %4503 = vst [vmem:[#allocation41_spill] sm:$0xff] %v4027_v56  ;;  %v4031_v6 = vadd.f32 %v953_v53, %v645_v39  ;;  %v991_v53 = vld [vmem:[%s4505_s15] sm:$0xff] }
 0x1ff   : > { %4504 = vst [vmem:[#allocation42_spill] sm:$0xff] %v4031_v6 }
 0x201   : > { %v1267_v62 = vpop.f32.mrb[20].mxu0  ;;  %v3025_v48 = vpop.eup %3024 }
 0x202   : > { %v1276_v28 = vadd.f32 %v1267_v62, %v918_v8  ;;  %v1269_v41 = vpop.f32.mrb[21].mxu0  ;;  %v3027_v1 = vpop.eup %3026  ;;  %v1297_v39 = vmul.f32 %v3025_v48, %v991_v53  ;;  %v4506_v8 = vmov 0  }
 0x203   : > { %v1277_v46 = vadd.f32 %v1269_v41, %v920_v50  ;;  %v1271_v49 = vpop.f32.mrb[22].mxu0  ;;  %v1565_v38 = vsel %vm1563_vm3, 1, %v4506_v8 }
 0x204   : > { %v2683_v56 = vmul.f32 -1.442695, %v1276_v28  ;;  %v1272_v34 = vpop.f32.mrb[23].mxu0  ;;  %1567 = vperm.xlu1 %2899, %v1565_v38  }
 0x205   : > { %3028 = vtanh.f32 %v1277_v46 }
 0x206   : > { %3030 = vpow2.f32 %v2683_v56 }
 0x20f   : > { %v3029_v7 = vpop.eup %3028 }
 0x210   : > { %v3031_v32 = vpop.eup %3030  ;;  %v1298_v62 = vmul.f32 %v3029_v7, %v3027_v1 }
 0x211   : > { %v1289_v4 = vadd.f32 1.0, %v3031_v32 }
 0x212   : > { %v4038_v37 = vadd.f32 %v1298_v62, %v1297_v39 }
 0x213   : > { %3032 = vrcp.f32 %v1289_v4 }
 0x214   : > { %3034 = vtanh.f32 %v4038_v37 }
 0x21d   : > { %v3033_v34 = vpop.eup %3032 }
 0x21e   : > { %v3035_v28 = vpop.eup %3034 }
 0x21f   : > { %v1301_v46 = vmul.f32 %v3035_v28, %v3033_v34 }
 0x221   : > { %v4045_v56 = vmul.f32 %v1301_v46, %v4042_v42  ;;  %v1320_v14 = vpack.c.bf16 %v1301_v46, %v1301_v46 }
 0x223   : > { %1354 = vmatmul.mubr.bf16.vlgmr.msra.gmra.mrb[20].mxu1 %v1320_v14  ;;  %1395 = vmatmul.mubr.bf16.vlgmr.msra.gmra.mrb[24].mxu0 %v1320_v14 }
 0x224   : > { %1452 = vmatpush1.bf16.msra.mxu1 %v3770_v33  ;;  %1493 = vmatpush1.bf16.msra.mxu0 %v3881_v12 }
 0x225   : > { %1453 = vmatprep.subr.bf16.mxu1 %v3777_v35  ;;  %1494 = vmatprep.subr.bf16.mxu0 %v3884_v13 }
 0x226   : > { %1483 = vmatprep.mubr.bf16.mxu1 %v4506_v8  ;;  %1524 = vmatprep.mubr.bf16.mxu0 %v4506_v8 }
 0x228   : > { %1454 = vmatpush1.bf16.msra.mxu1 %v3779_v36  ;;  %1495 = vmatpush1.bf16.msra.mxu0 %v3891_v15 }
 0x229   : > { %1455 = vmatprep.subr.bf16.mxu1 %v3789_v40  ;;  %1496 = vmatprep.subr.bf16.mxu0 %v3895_v16 }
 0x22c   : > { %1456 = vmatpush1.bf16.msra.mxu1 %v3800_v44  ;;  %1497 = vmatpush1.bf16.msra.mxu0 %v3901_v17 }
 0x22d   : > { %1457 = vmatprep.subr.bf16.mxu1 %v3803_v45  ;;  %1498 = vmatprep.subr.bf16.mxu0 %v3904_v18 }
 0x230   : > { %1458 = vmatpush1.bf16.msra.mxu1 %v3808_v47  ;;  %1499 = vmatpush1.bf16.msra.mxu0 %v3910_v19 }
 0x231   : > { %1459 = vmatprep.subr.bf16.mxu1 %v3817_v51  ;;  %1500 = vmatprep.subr.bf16.mxu0 %v3914_v20 }
 0x234   : > { %1460 = vmatpush1.bf16.msra.mxu1 %v3828_v55  ;;  %1501 = vmatpush1.bf16.msra.mxu0 %v3919_v21 }
 0x235   : > { %1461 = vmatprep.subr.bf16.mxu1 %v3834_v57  ;;  %1502 = vmatprep.subr.bf16.mxu0 %v3922_v22 }
 0x238   : > { %1462 = vmatpush1.bf16.msra.mxu1 %v3836_v58  ;;  %1503 = vmatpush1.bf16.msra.mxu0 %v3928_v23 }
 0x239   : > { %1463 = vmatprep.subr.bf16.mxu1 %v3848_v63  ;;  %1504 = vmatprep.subr.bf16.mxu0 %v3932_v24 }
 0x23c   : > { %1464 = vmatpush1.bf16.msra.mxu1 %v3856_v3  ;;  %1505 = vmatpush1.bf16.msra.mxu0 %v3937_v25 }
 0x23d   : > { %1465 = vmatprep.subr.bf16.mxu1 %v3861_v5  ;;  %1506 = vmatprep.subr.bf16.mxu0 %v3940_v26 }
 0x240   : > { %1466 = vmatpush1.bf16.msra.mxu1 %v3871_v10  ;;  %1507 = vmatpush1.bf16.msra.mxu0 %v3946_v27 }
 0x241   : > { %1581 = vmatprep.subr.bf16.mxu1 %v3762_v30  ;;  %1622 = vmatprep.subr.bf16.mxu0 %v3869_v9 }
 0x2f6   : > { %v1355_v50 = vpop.f32.mrb[20].mxu1  ;;  %v1396_v41 = vpop.f32.mrb[24].mxu0 }
 0x2f7   : > { %v1403_v49 = vadd.f32 %v1355_v50, %v3977_v52  ;;  %v1405_v48 = vadd.f32 %v1396_v41, %v4005_v11  ;;  %v1357_v53 = vpop.f32.mrb[21].mxu1  ;;  %v1398_v1 = vpop.f32.mrb[25].mxu0 }
 0x2f8   : > { %v1404_v7 = vadd.f32 %v1357_v53, %v3979_v54  ;;  %v1406_v32 = vadd.f32 %v1398_v1, %v4007_v60  ;;  %v1359_v39 = vpop.f32.mrb[22].mxu1  ;;  %v1400_v62 = vpop.f32.mrb[26].mxu0 }
 0x2f9   : > { %v2684_v4 = vmul.f32 -1.442695, %v1403_v49  ;;  %v1360_v34 = vpop.f32.mrb[23].mxu1  ;;  %v1401_v28 = vpop.f32.mrb[27].mxu0  ;;  %v2686_v14 = vmul.f32 -1.442695, %v1405_v48 }
 0x2fa   : > { %v2685_v46 = vmul.f32 -1.442695, %v1404_v7  ;;  %v1440_v34 = vstv %s1432_s30 }
 0x2fb   : > { %3036 = vpow2.f32 %v2684_v4  ;;  %v1311_v4 = vstv %s1303_s29 }
 0x2fc   : > { %3038 = vpow2.f32 %v2685_v46 }
 0x2fd   : > { %3040 = vtanh.f32 %v1406_v32 }
 0x2fe   : > { %3042 = vpow2.f32 %v2686_v14 }
 0x305   : > { %v3037_v38 = vpop.eup %3036 }
 0x306   : > { %v1416_v6 = vadd.f32 1.0, %v3037_v38  ;;  %v3039_v52 = vpop.eup %3038 }
 0x307   : > { %v1417_v11 = vadd.f32 1.0, %v3039_v52  ;;  %v3041_v54 = vpop.eup %3040 }
 0x308   : > { %3044 = vrcp.f32 %v1416_v6  ;;  %v3043_v50 = vpop.eup %3042  ;;  %v1309_v6 = vpop.permute.xlu0 %1308 }
 0x309   : > { %3046 = vrcp.f32 %v1417_v11  ;;  %v1418_v49 = vadd.f32 1.0, %v3043_v50  ;;  %vm1310_vm4 = vcmp.eq.s32.totalorder %v1309_v6, 1 }
 0x30a   : > { %v4097_v46 = vsel %vm1310_vm4, %v4045_v56, %v1311_v4 }
 0x30b   : > { %3048 = vrcp.f32 %v1418_v49 }
 0x30c   : > { %v1438_v32 = vpop.permute.xlu0 %1437 }
 0x30d   : > { %vm1439_vm5 = vcmp.eq.s32.totalorder %v1438_v32, 1 }
 0x312   : > { %v3045_v60 = vpop.eup %3044 }
 0x313   : > { %v1427_v41 = vmul.f32 %v3045_v60, %v3041_v54  ;;  %v3047_v53 = vpop.eup %3046 }
 0x314   : > { %v1426_v48 = vmul.f32 %v3047_v53, %v4038_v37 }
 0x315   : > { %v3049_v7 = vpop.eup %3048 }
 0x316   : > { %v4090_v1 = vadd.f32 %v1427_v41, %v1426_v48 }
 0x318   : > { %3050 = vtanh.f32 %v4090_v1 }
 0x322   : > { %v3051_v39 = vpop.eup %3050 }
 0x323   : > { %v1430_v62 = vmul.f32 %v3051_v39, %v3049_v7 }
 0x325   : > { %v1434_v37 = vmul.f32 %v1430_v62, %v4042_v42  ;;  %v1450_v28 = vpack.c.bf16 %v1430_v62, %v1430_v62 }
 0x327   : > { %v4099_v14 = vsel %vm1439_vm5, %v1434_v37, %v1440_v34  ;;  %1484 = vmatmul.mubr.bf16.vlgmr.msra.gmra.mrb[24].mxu1 %v1450_v28  ;;  %1525 = vmatmul.mubr.bf16.vlgmr.msra.gmra.mrb[28].mxu0 %v1450_v28 }
 0x328   : > { %v1442_v38 = vmax.f32 %v4097_v46, %v4099_v14  ;;  %1582 = vmatpush1.bf16.msra.mxu1 %v3770_v33  ;;  %1623 = vmatpush1.bf16.msra.mxu0 %v3881_v12  ;;  %v1695_v33 = vsel %vm1693_vm6, 1, %v4506_v8  ;;  %v4168_v46 = vld [vmem:[#allocation10 + $0x44] ss:$16 sps:$4 sm:$0xff]  }
 0x329   : > { %1583 = vmatprep.subr.bf16.mxu1 %v3777_v35  ;;  %1624 = vmatprep.subr.bf16.mxu0 %v3884_v13  ;;  %v4509_v14 = vld [vmem:[#allocation35_spill] sm:$0xff] }
 0x32a   : > { %1613 = vmatprep.mubr.bf16.mxu1 %v4506_v8  ;;  %1654 = vmatprep.mubr.bf16.mxu0 %v4506_v8 }
 0x32b   : > { %1697 = vperm.xlu1 %2899, %v1695_v33  }
 0x32c   : > { %1584 = vmatpush1.bf16.msra.mxu1 %v3779_v36  ;;  %1625 = vmatpush1.bf16.msra.mxu0 %v3891_v15 }
 0x32d   : > { %1585 = vmatprep.subr.bf16.mxu1 %v3789_v40  ;;  %1626 = vmatprep.subr.bf16.mxu0 %v3895_v16 }
 0x330   : > { %1586 = vmatpush1.bf16.msra.mxu1 %v3800_v44  ;;  %1627 = vmatpush1.bf16.msra.mxu0 %v3901_v17 }
 0x331   : > { %1587 = vmatprep.subr.bf16.mxu1 %v3803_v45  ;;  %1628 = vmatprep.subr.bf16.mxu0 %v3904_v18 }
 0x334   : > { %1588 = vmatpush1.bf16.msra.mxu1 %v3808_v47  ;;  %1629 = vmatpush1.bf16.msra.mxu0 %v3910_v19 }
 0x335   : > { %1589 = vmatprep.subr.bf16.mxu1 %v3817_v51  ;;  %1630 = vmatprep.subr.bf16.mxu0 %v3914_v20 }
 0x338   : > { %1590 = vmatpush1.bf16.msra.mxu1 %v3828_v55  ;;  %1631 = vmatpush1.bf16.msra.mxu0 %v3919_v21 }
 0x339   : > { %1591 = vmatprep.subr.bf16.mxu1 %v3834_v57  ;;  %1632 = vmatprep.subr.bf16.mxu0 %v3922_v22 }
 0x33c   : > { %1592 = vmatpush1.bf16.msra.mxu1 %v3836_v58  ;;  %1633 = vmatpush1.bf16.msra.mxu0 %v3928_v23 }
 0x33d   : > { %1593 = vmatprep.subr.bf16.mxu1 %v3848_v63  ;;  %1634 = vmatprep.subr.bf16.mxu0 %v3932_v24 }
 0x340   : > { %1594 = vmatpush1.bf16.msra.mxu1 %v3856_v3  ;;  %1635 = vmatpush1.bf16.msra.mxu0 %v3937_v25 }
 0x341   : > { %1595 = vmatprep.subr.bf16.mxu1 %v3861_v5  ;;  %1636 = vmatprep.subr.bf16.mxu0 %v3940_v26 }
 0x344   : > { %1596 = vmatpush1.bf16.msra.mxu1 %v3871_v10  ;;  %1637 = vmatpush1.bf16.msra.mxu0 %v3946_v27 }
 0x345   : > { %1711 = vmatprep.subr.bf16.mxu1 %v3762_v30  ;;  %1752 = vmatprep.subr.bf16.mxu0 %v3869_v9 }
 0x3fa   : > { %v1485_v35 = vpop.f32.mrb[24].mxu1  ;;  %v1526_v36 = vpop.f32.mrb[28].mxu0 }
 0x3fb   : > { %v1533_v40 = vadd.f32 %v1485_v35, %v3981_v59  ;;  %v1535_v56 = vadd.f32 %v1526_v36, %v4009_v31  ;;  %v1487_v52 = vpop.f32.mrb[25].mxu1  ;;  %v1528_v11 = vpop.f32.mrb[29].mxu0 }
 0x3fc   : > { %v1534_v54 = vadd.f32 %v1487_v52, %v3983_v61  ;;  %v1536_v50 = vadd.f32 %v1528_v11, %v4011_v43  ;;  %v1489_v30 = vpop.f32.mrb[26].mxu1  ;;  %v1530_v60 = vpop.f32.mrb[30].mxu0 }
 0x3fd   : > { %v2687_v41 = vmul.f32 -1.442695, %v1533_v40  ;;  %v1490_v53 = vpop.f32.mrb[27].mxu1  ;;  %v1531_v49 = vpop.f32.mrb[31].mxu0  ;;  %v2689_v6 = vmul.f32 -1.442695, %v1535_v56  ;;  %v1570_v56 = vstv %s1562_s26 }
 0x3fe   : > { %v2688_v48 = vmul.f32 -1.442695, %v1534_v54  ;;  %v1568_v35 = vpop.permute.xlu1 %1567  ;;  %v4158_v30 = vld [vmem:[#allocation10 + $0x24] ss:$16 sps:$4 sm:$0xff]   ;;  %v4164_v60 = vld [vmem:[#allocation10 + $0x20] ss:$16 sps:$4 sm:$0xff]  }
 0x3ff   : > { %3052 = vpow2.f32 %v2687_v41  ;;  %vm1569_vm7 = vcmp.eq.s32.totalorder %v1568_v35, 1 }
 0x400   : > { %3054 = vpow2.f32 %v2688_v48 }
 0x401   : > { %3056 = vtanh.f32 %v1536_v50  ;;  %v4154_v50 = vld [vmem:[#allocation10] ss:$16 sps:$4 sm:$0xff]  }
 0x402   : > { %3058 = vpow2.f32 %v2689_v6  ;;  %v1698_v35 = vpop.permute.xlu1 %1697 }
 0x403   : > { %vm1699_vm9 = vcmp.eq.s32.totalorder %v1698_v35, 1 }
 0x409   : > { %v3053_v7 = vpop.eup %3052 }
 0x40a   : > { %v1546_v32 = vadd.f32 1.0, %v3053_v7  ;;  %v3055_v59 = vpop.eup %3054 }
 0x40b   : > { %v1547_v31 = vadd.f32 1.0, %v3055_v59  ;;  %v3057_v61 = vpop.eup %3056 }
 0x40c   : > { %3060 = vrcp.f32 %v1546_v32  ;;  %v3059_v43 = vpop.eup %3058 }
 0x40d   : > { %3062 = vrcp.f32 %v1547_v31  ;;  %v1548_v34 = vadd.f32 1.0, %v3059_v43 }
 0x40f   : > { %3064 = vrcp.f32 %v1548_v34 }
 0x416   : > { %v3061_v39 = vpop.eup %3060 }
 0x417   : > { %v1557_v62 = vmul.f32 %v3061_v39, %v3057_v61  ;;  %v3063_v4 = vpop.eup %3062 }
 0x418   : > { %v1556_v37 = vmul.f32 %v3063_v4, %v4090_v1 }
 0x419   : > { %v3065_v33 = vpop.eup %3064 }
 0x41a   : > { %v4144_v28 = vadd.f32 %v1557_v62, %v1556_v37 }
 0x41c   : > { %3066 = vtanh.f32 %v4144_v28 }
 0x426   : > { %v3067_v36 = vpop.eup %3066 }
 0x427   : > { %v1560_v40 = vmul.f32 %v3067_v36, %v3065_v33 }
 0x429   : > { %v1564_v52 = vmul.f32 %v1560_v40, %v4042_v42  ;;  %v1580_v11 = vpack.c.bf16 %v1560_v40, %v1560_v40 }
 0x42b   : > { %v1571_v54 = vsel %vm1569_vm7, %v1564_v52, %v1570_v56  ;;  %1614 = vmatmul.mubr.bf16.vlgmr.msra.gmra.mrb[28].mxu1 %v1580_v11  ;;  %1655 = vmatmul.mubr.bf16.vlgmr.msra.gmra.mrb[32].mxu0 %v1580_v11  ;;  %v1700_v56 = vstv %s1692_s28 }
 0x42c   : > { %v4152_v1 = vmax.f32 %v1442_v38, %v1571_v54  ;;  %1712 = vmatpush1.bf16.msra.mxu1 %v4154_v50  ;;  %1753 = vmatpush1.bf16.msra.mxu0 %v3881_v12 }
 0x42d   : > { %1713 = vmatprep.subr.bf16.mxu1 %v4158_v30  ;;  %1754 = vmatprep.subr.bf16.mxu0 %v3884_v13 }
 0x42e   : > { %1743 = vmatprep.mubr.bf16.mxu1 %v4506_v8  ;;  %1784 = vmatprep.mubr.bf16.mxu0 %v4506_v8 }
 0x430   : > { %1714 = vmatpush1.bf16.msra.mxu1 %v4164_v60  ;;  %1755 = vmatpush1.bf16.msra.mxu0 %v3891_v15 }
 0x431   : > { %1715 = vmatprep.subr.bf16.mxu1 %v4168_v46  ;;  %1756 = vmatprep.subr.bf16.mxu0 %v3895_v16 }
 0x434   : > { %1716 = vmatpush1.bf16.msra.mxu1 %v3800_v44  ;;  %1757 = vmatpush1.bf16.msra.mxu0 %v3901_v17  ;;  %v4194_v44 = vld [vmem:[#allocation10 + $0x4] ss:$16 sps:$4 sm:$0xff]  }
 0x435   : > { %1717 = vmatprep.subr.bf16.mxu1 %v3803_v45  ;;  %1758 = vmatprep.subr.bf16.mxu0 %v3904_v18  ;;  %v1825_v45 = vsel %vm1823_vm8, 1, %v4506_v8 }
 0x436   : > { %1827 = vperm.xlu0 %2898, %v1825_v45   ;;  %v4224_v45 = vld [vmem:[#allocation10 + $0x40] ss:$16 sps:$4 sm:$0xff]  }
 0x438   : > { %1718 = vmatpush1.bf16.msra.mxu1 %v3808_v47  ;;  %1759 = vmatpush1.bf16.msra.mxu0 %v3910_v19 }
 0x439   : > { %1719 = vmatprep.subr.bf16.mxu1 %v3817_v51  ;;  %1760 = vmatprep.subr.bf16.mxu0 %v3914_v20 }
 0x43c   : > { %1720 = vmatpush1.bf16.msra.mxu1 %v3828_v55  ;;  %1761 = vmatpush1.bf16.msra.mxu0 %v3919_v21 }
 0x43d   : > { %1721 = vmatprep.subr.bf16.mxu1 %v3834_v57  ;;  %1762 = vmatprep.subr.bf16.mxu0 %v3922_v22  ;;  %v4507_v57 = vld [vmem:[#allocation34_spill] sm:$0xff] }
 0x440   : > { %1722 = vmatpush1.bf16.msra.mxu1 %v3836_v58  ;;  %1763 = vmatpush1.bf16.msra.mxu0 %v3928_v23 }
 0x441   : > { %1723 = vmatprep.subr.bf16.mxu1 %v3848_v63  ;;  %1764 = vmatprep.subr.bf16.mxu0 %v3932_v24 }
 0x444   : > { %1724 = vmatpush1.bf16.msra.mxu1 %v3856_v3  ;;  %1765 = vmatpush1.bf16.msra.mxu0 %v3937_v25 }
 0x445   : > { %1725 = vmatprep.subr.bf16.mxu1 %v3861_v5  ;;  %1766 = vmatprep.subr.bf16.mxu0 %v3940_v26  ;;  %v4508_v5 = vld [vmem:[#allocation25_spill] sm:$0xff] }
 0x448   : > { %1726 = vmatpush1.bf16.msra.mxu1 %v3871_v10  ;;  %1767 = vmatpush1.bf16.msra.mxu0 %v3946_v27 }
 0x449   : > { %1841 = vmatprep.subr.bf16.mxu1 %v4194_v44  ;;  %1882 = vmatprep.subr.bf16.mxu0 %v3869_v9 }
 0x4b5   : > { %v1828_v35 = vpop.permute.xlu0 %1827 }
 0x4b6   : > { %vm1829_vm11 = vcmp.eq.s32.totalorder %v1828_v35, 1 }
 0x4fe   : > { %v1615_v47 = vpop.f32.mrb[28].mxu1  ;;  %v1656_v51 = vpop.f32.mrb[32].mxu0 }
 0x4ff   : > { %v1663_v55 = vadd.f32 %v1615_v47, %v3985_v0  ;;  %v1665_v58 = vadd.f32 %v1656_v51, %v4507_v57  ;;  %v1617_v63 = vpop.f32.mrb[29].mxu1  ;;  %v1658_v3 = vpop.f32.mrb[33].mxu0  ;;  %v4510_v51 = vld [vmem:[#allocation26_spill] sm:$0xff]  ;;  %v4511_v57 = vld [vmem:[#allocation36_spill] sm:$0xff] }
 0x500   : > { %v1664_v10 = vadd.f32 %v1617_v63, %v4508_v5  ;;  %v1666_v38 = vadd.f32 %v1658_v3, %v4509_v14  ;;  %v1619_v41 = vpop.f32.mrb[30].mxu1  ;;  %v1660_v53 = vpop.f32.mrb[34].mxu0  ;;  %v4512_v3 = vld [vmem:[#allocation27_spill] sm:$0xff] }
 0x501   : > { %v2690_v9 = vmul.f32 -1.442695, %v1663_v55  ;;  %v1620_v49 = vpop.f32.mrb[31].mxu1  ;;  %v1661_v2 = vpop.f32.mrb[35].mxu0  ;;  %v2692_v6 = vmul.f32 -1.442695, %v1665_v58 }
 0x502   : > { %v2691_v48 = vmul.f32 -1.442695, %v1664_v10  ;;  %v4513_v10 = vld [vmem:[#allocation37_spill] sm:$0xff] }
 0x503   : > { %3068 = vpow2.f32 %v2690_v9 }
 0x504   : > { %3070 = vpow2.f32 %v2691_v48 }
 0x505   : > { %3072 = vtanh.f32 %v1666_v38 }
 0x506   : > { %3074 = vpow2.f32 %v2692_v6 }
 0x50d   : > { %v3069_v7 = vpop.eup %3068 }
 0x50e   : > { %v1676_v32 = vadd.f32 1.0, %v3069_v7  ;;  %v3071_v0 = vpop.eup %3070 }
 0x50f   : > { %v1677_v59 = vadd.f32 1.0, %v3071_v0  ;;  %v3073_v31 = vpop.eup %3072 }
 0x510   : > { %3076 = vrcp.f32 %v1676_v32  ;;  %v3075_v61 = vpop.eup %3074 }
 0x511   : > { %3078 = vrcp.f32 %v1677_v59  ;;  %v1678_v4 = vadd.f32 1.0, %v3075_v61 }
 0x513   : > { %3080 = vrcp.f32 %v1678_v4 }
 0x51a   : > { %v3077_v43 = vpop.eup %3076 }
 0x51b   : > { %v1687_v39 = vmul.f32 %v3077_v43, %v3073_v31  ;;  %v3079_v62 = vpop.eup %3078 }
 0x51c   : > { %v1686_v34 = vmul.f32 %v3079_v62, %v4144_v28 }
 0x51d   : > { %v3081_v33 = vpop.eup %3080 }
 0x51e   : > { %v4205_v37 = vadd.f32 %v1687_v39, %v1686_v34 }
 0x520   : > { %3082 = vtanh.f32 %v4205_v37 }
 0x52a   : > { %v3083_v36 = vpop.eup %3082 }
 0x52b   : > { %v1690_v40 = vmul.f32 %v3083_v36, %v3081_v33 }
 0x52d   : > { %v1694_v52 = vmul.f32 %v1690_v40, %v4042_v42  ;;  %v1710_v11 = vpack.c.bf16 %v1690_v40, %v1690_v40 }
 0x52f   : > { %v4210_v54 = vsel %vm1699_vm9, %v1694_v52, %v1700_v56  ;;  %1744 = vmatmul.mubr.bf16.vlgmr.msra.gmra.mrb[32].mxu1 %v1710_v11  ;;  %1785 = vmatmul.mubr.bf16.vlgmr.msra.gmra.mrb[36].mxu0 %v1710_v11 }
 0x530   : > { %v1702_v28 = vmax.f32 %v4152_v1, %v4210_v54  ;;  %1842 = vmatpush1.bf16.msra.mxu1 %v4154_v50  ;;  %1883 = vmatpush1.bf16.msra.mxu0 %v3881_v12  ;;  %v4228_v12 = vld [vmem:[#allocation10 + $0x64] ss:$16 sps:$4 sm:$0xff]   ;;  %v4303_v1 = vld [vmem:[#allocation10 + $0x28] ss:$16 sps:$4 sm:$0xff]   ;;  %v4307_v54 = vld [vmem:[#allocation10 + $0x4c] ss:$16 sps:$4 sm:$0xff]  }
 0x531   : > { %1843 = vmatprep.subr.bf16.mxu1 %v4158_v30  ;;  %1884 = vmatprep.subr.bf16.mxu0 %v3884_v13  ;;  %v4232_v13 = vld [vmem:[#allocation10 + $0x60] ss:$16 sps:$4 sm:$0xff]  }
 0x532   : > { %1873 = vmatprep.mubr.bf16.mxu1 %v4506_v8  ;;  %1914 = vmatprep.mubr.bf16.mxu0 %v4506_v8 }
 0x534   : > { %1844 = vmatpush1.bf16.msra.mxu1 %v4164_v60  ;;  %1885 = vmatpush1.bf16.msra.mxu0 %v3891_v15  ;;  %v4236_v15 = vld [vmem:[#allocation10 + $0x84] ss:$16 sps:$4 sm:$0xff]  }
 0x535   : > { %1845 = vmatprep.subr.bf16.mxu1 %v4168_v46  ;;  %1886 = vmatprep.subr.bf16.mxu0 %v3895_v16  ;;  %v4240_v16 = vld [vmem:[#allocation10 + $0x80] ss:$16 sps:$4 sm:$0xff]  }
 0x538   : > { %1846 = vmatpush1.bf16.msra.mxu1 %v4224_v45  ;;  %1887 = vmatpush1.bf16.msra.mxu0 %v3901_v17  ;;  %v4244_v17 = vld [vmem:[#allocation10 + $0xa4] ss:$16 sps:$4 sm:$0xff]  }
 0x539   : > { %1847 = vmatprep.subr.bf16.mxu1 %v4228_v12  ;;  %1888 = vmatprep.subr.bf16.mxu0 %v3904_v18  ;;  %v4248_v18 = vld [vmem:[#allocation10 + $0xa0] ss:$16 sps:$4 sm:$0xff]  }
 0x53c   : > { %1848 = vmatpush1.bf16.msra.mxu1 %v4232_v13  ;;  %1889 = vmatpush1.bf16.msra.mxu0 %v3910_v19  ;;  %v4252_v19 = vld [vmem:[#allocation10 + $0xc4] ss:$16 sps:$4 sm:$0xff]  }
 0x53d   : > { %1849 = vmatprep.subr.bf16.mxu1 %v4236_v15  ;;  %1890 = vmatprep.subr.bf16.mxu0 %v3914_v20  ;;  %v4256_v20 = vld [vmem:[#allocation10 + $0xc0] ss:$16 sps:$4 sm:$0xff]  }
 0x540   : > { %1850 = vmatpush1.bf16.msra.mxu1 %v4240_v16  ;;  %1891 = vmatpush1.bf16.msra.mxu0 %v3919_v21  ;;  %v4260_v21 = vld [vmem:[#allocation10 + $0xe4] ss:$16 sps:$4 sm:$0xff]  }
 0x541   : > { %1851 = vmatprep.subr.bf16.mxu1 %v4244_v17  ;;  %1892 = vmatprep.subr.bf16.mxu0 %v3922_v22  ;;  %v4264_v22 = vld [vmem:[#allocation10 + $0xe0] ss:$16 sps:$4 sm:$0xff]  }
 0x544   : > { %1852 = vmatpush1.bf16.msra.mxu1 %v4248_v18  ;;  %1893 = vmatpush1.bf16.msra.mxu0 %v3928_v23  ;;  %v4269_v23 = vld [vmem:[#allocation10 + $0xc] ss:$16 sps:$4 sm:$0xff]  }
 0x545   : > { %1853 = vmatprep.subr.bf16.mxu1 %v4252_v19  ;;  %1894 = vmatprep.subr.bf16.mxu0 %v3932_v24  ;;  %v4273_v24 = vld [vmem:[%s3661_s18] sm:$0xff]  ;;  %s1822_s18 = scalar_select %p1821_p2, 0.0, -inf }
 0x546   : > { %vm1953_vm10 = vcmp.gt.s32.totalorder %v4273_v24, 5  ;;  %vm2083_vm12 = vcmp.gt.s32.totalorder %v4273_v24, 6  ;;  %vm2213_vm14 = vcmp.gt.s32.totalorder %v4273_v24, 7 }
 0x547   : > { %v1830_v56 = vstv %s1822_s18 }
 0x548   : > { %1854 = vmatpush1.bf16.msra.mxu1 %v4256_v20  ;;  %1895 = vmatpush1.bf16.msra.mxu0 %v3937_v25  ;;  %v1955_v25 = vsel %vm1953_vm10, 1, %v4506_v8 }
 0x549   : > { %1855 = vmatprep.subr.bf16.mxu1 %v4260_v21  ;;  %1896 = vmatprep.subr.bf16.mxu0 %v3940_v26 }
 0x54a   : > { %1957 = vperm.xlu1 %2899, %v1955_v25  }
 0x54c   : > { %1856 = vmatpush1.bf16.msra.mxu1 %v4264_v22  ;;  %1897 = vmatpush1.bf16.msra.mxu0 %v3946_v27 }
 0x54d   : > { %1971 = vmatprep.subr.bf16.mxu1 %v4194_v44  ;;  %2012 = vmatprep.subr.bf16.mxu0 %v4269_v23 }
 0x602   : > { %v1745_v26 = vpop.f32.mrb[32].mxu1  ;;  %v1786_v47 = vpop.f32.mrb[36].mxu0 }
 0x603   : > { %v1793_v55 = vadd.f32 %v1745_v26, %v4510_v51  ;;  %v1795_v58 = vadd.f32 %v1786_v47, %v4511_v57  ;;  %v1747_v27 = vpop.f32.mrb[33].mxu1  ;;  %v1788_v63 = vpop.f32.mrb[37].mxu0  ;;  %v4293_v26 = vld [vmem:[#allocation10 + $0x8] ss:$16 sps:$4 sm:$0xff]   ;;  %v4297_v47 = vld [vmem:[#allocation10 + $0x2c] ss:$16 sps:$4 sm:$0xff]  }
 0x604   : > { %v1794_v5 = vadd.f32 %v1747_v27, %v4512_v3  ;;  %v1796_v14 = vadd.f32 %v1788_v63, %v4513_v10  ;;  %v1749_v38 = vpop.f32.mrb[34].mxu1  ;;  %v1790_v41 = vpop.f32.mrb[38].mxu0  ;;  %v4315_v51 = vld [vmem:[#allocation10 + $0x6c] ss:$16 sps:$4 sm:$0xff]   ;;  %v4335_v63 = vld [vmem:[#allocation10 + $0xa8] ss:$16 sps:$4 sm:$0xff]  }
 0x605   : > { %v2693_v53 = vmul.f32 -1.442695, %v1793_v55  ;;  %v1750_v9 = vpop.f32.mrb[35].mxu1  ;;  %v1791_v49 = vpop.f32.mrb[39].mxu0  ;;  %v2695_v48 = vmul.f32 -1.442695, %v1795_v58 }
 0x606   : > { %v2694_v2 = vmul.f32 -1.442695, %v1794_v5  ;;  %v4319_v55 = vld [vmem:[#allocation10 + $0x68] ss:$16 sps:$4 sm:$0xff]   ;;  %v4323_v57 = vld [vmem:[#allocation10 + $0x8c] ss:$16 sps:$4 sm:$0xff]  }
 0x607   : > { %3084 = vpow2.f32 %v2693_v53  ;;  %v4327_v58 = vld [vmem:[#allocation10 + $0x88] ss:$16 sps:$4 sm:$0xff]   ;;  %v4331_v27 = vld [vmem:[#allocation10 + $0xac] ss:$16 sps:$4 sm:$0xff]   ;;  %v2085_v38 = vsel %vm2083_vm12, 1, %v4506_v8 }
 0x608   : > { %3086 = vpow2.f32 %v2694_v2  ;;  %v4339_v3 = vld [vmem:[#allocation10 + $0xcc] ss:$16 sps:$4 sm:$0xff]   ;;  %v4343_v5 = vld [vmem:[#allocation10 + $0xc8] ss:$16 sps:$4 sm:$0xff]   ;;  %2087 = vperm.xlu0 %2898, %v2085_v38  }
 0x609   : > { %3088 = vtanh.f32 %v1796_v14  ;;  %v4347_v10 = vld [vmem:[#allocation10 + $0xec] ss:$16 sps:$4 sm:$0xff]   ;;  %v4351_v14 = vld [vmem:[#allocation10 + $0xe8] ss:$16 sps:$4 sm:$0xff]  }
 0x60a   : > { %3090 = vpow2.f32 %v2695_v48  ;;  %v4514_v9 = vld [vmem:[#allocation28_spill] sm:$0xff]  ;;  %v4515_v2 = vld [vmem:[#allocation38_spill] sm:$0xff] }
 0x611   : > { %v3085_v6 = vpop.eup %3084 }
 0x612   : > { %v1806_v7 = vadd.f32 1.0, %v3085_v6  ;;  %v3087_v32 = vpop.eup %3086 }
 0x613   : > { %v1807_v0 = vadd.f32 1.0, %v3087_v32  ;;  %v3089_v59 = vpop.eup %3088  ;;  %v4516_v32 = vld [vmem:[#allocation29_spill] sm:$0xff] }
 0x614   : > { %3092 = vrcp.f32 %v1806_v7  ;;  %v3091_v31 = vpop.eup %3090 }
 0x615   : > { %3094 = vrcp.f32 %v1807_v0  ;;  %v1808_v62 = vadd.f32 1.0, %v3091_v31 }
 0x617   : > { %3096 = vrcp.f32 %v1808_v62 }
 0x61e   : > { %v3093_v61 = vpop.eup %3092 }
 0x61f   : > { %v1817_v43 = vmul.f32 %v3093_v61, %v3089_v59  ;;  %v3095_v39 = vpop.eup %3094  ;;  %v4517_v59 = vld [vmem:[#allocation39_spill] sm:$0xff] }
 0x620   : > { %v1816_v4 = vmul.f32 %v3095_v39, %v4205_v37 }
 0x621   : > { %v3097_v33 = vpop.eup %3096 }
 0x622   : > { %v4282_v34 = vadd.f32 %v1817_v43, %v1816_v4 }
 0x624   : > { %3098 = vtanh.f32 %v4282_v34 }
 0x62e   : > { %v3099_v36 = vpop.eup %3098 }
 0x62f   : > { %v1820_v40 = vmul.f32 %v3099_v36, %v3097_v33 }
 0x631   : > { %v1824_v52 = vmul.f32 %v1820_v40, %v4042_v42  ;;  %v1840_v11 = vpack.c.bf16 %v1820_v40, %v1820_v40 }
 0x633   : > { %v1831_v25 = vsel %vm1829_vm11, %v1824_v52, %v1830_v56  ;;  %1874 = vmatmul.mubr.bf16.vlgmr.msra.gmra.mrb[36].mxu1 %v1840_v11  ;;  %1915 = vmatmul.mubr.bf16.vlgmr.msra.gmra.mrb[40].mxu0 %v1840_v11 }
 0x634   : > { %v4290_v37 = vmax.f32 %v1702_v28, %v1831_v25  ;;  %1972 = vmatpush1.bf16.msra.mxu1 %v4154_v50  ;;  %2013 = vmatpush1.bf16.msra.mxu0 %v4293_v26  ;;  %v4311_v28 = vld [vmem:[#allocation10 + $0x48] ss:$16 sps:$4 sm:$0xff]  }
 0x635   : > { %1973 = vmatprep.subr.bf16.mxu1 %v4158_v30  ;;  %2014 = vmatprep.subr.bf16.mxu0 %v4297_v47 }
 0x636   : > { %2003 = vmatprep.mubr.bf16.mxu1 %v4506_v8  ;;  %2044 = vmatprep.mubr.bf16.mxu0 %v4506_v8 }
 0x638   : > { %1974 = vmatpush1.bf16.msra.mxu1 %v4164_v60  ;;  %2015 = vmatpush1.bf16.msra.mxu0 %v4303_v1 }
 0x639   : > { %1975 = vmatprep.subr.bf16.mxu1 %v4168_v46  ;;  %2016 = vmatprep.subr.bf16.mxu0 %v4307_v54 }
 0x63c   : > { %1976 = vmatpush1.bf16.msra.mxu1 %v4224_v45  ;;  %2017 = vmatpush1.bf16.msra.mxu0 %v4311_v28 }
 0x63d   : > { %1977 = vmatprep.subr.bf16.mxu1 %v4228_v12  ;;  %2018 = vmatprep.subr.bf16.mxu0 %v4315_v51 }
 0x640   : > { %1978 = vmatpush1.bf16.msra.mxu1 %v4232_v13  ;;  %2019 = vmatpush1.bf16.msra.mxu0 %v4319_v55 }
 0x641   : > { %1979 = vmatprep.subr.bf16.mxu1 %v4236_v15  ;;  %2020 = vmatprep.subr.bf16.mxu0 %v4323_v57 }
 0x644   : > { %1980 = vmatpush1.bf16.msra.mxu1 %v4240_v16  ;;  %2021 = vmatpush1.bf16.msra.mxu0 %v4327_v58 }
 0x645   : > { %1981 = vmatprep.subr.bf16.mxu1 %v4244_v17  ;;  %2022 = vmatprep.subr.bf16.mxu0 %v4331_v27 }
 0x648   : > { %1982 = vmatpush1.bf16.msra.mxu1 %v4248_v18  ;;  %2023 = vmatpush1.bf16.msra.mxu0 %v4335_v63 }
 0x649   : > { %1983 = vmatprep.subr.bf16.mxu1 %v4252_v19  ;;  %2024 = vmatprep.subr.bf16.mxu0 %v4339_v3 }
 0x64c   : > { %1984 = vmatpush1.bf16.msra.mxu1 %v4256_v20  ;;  %2025 = vmatpush1.bf16.msra.mxu0 %v4343_v5 }
 0x64d   : > { %1985 = vmatprep.subr.bf16.mxu1 %v4260_v21  ;;  %2026 = vmatprep.subr.bf16.mxu0 %v4347_v10 }
 0x650   : > { %1986 = vmatpush1.bf16.msra.mxu1 %v4264_v22  ;;  %2027 = vmatpush1.bf16.msra.mxu0 %v4351_v14 }
 0x651   : > { %2101 = vmatprep.subr.bf16.mxu1 %v4194_v44  ;;  %2142 = vmatprep.subr.bf16.mxu0 %v4269_v23 }
 0x706   : > { %v1875_v41 = vpop.f32.mrb[36].mxu1  ;;  %v1916_v53 = vpop.f32.mrb[40].mxu0 }
 0x707   : > { %v1923_v49 = vadd.f32 %v1875_v41, %v4514_v9  ;;  %v1925_v48 = vadd.f32 %v1916_v53, %v4515_v2  ;;  %v1877_v6 = vpop.f32.mrb[37].mxu1  ;;  %v1918_v7 = vpop.f32.mrb[41].mxu0 }
 0x708   : > { %v1924_v0 = vadd.f32 %v1877_v6, %v4516_v32  ;;  %v1926_v31 = vadd.f32 %v1918_v7, %v4517_v59  ;;  %v1879_v44 = vpop.f32.mrb[38].mxu1  ;;  %v1920_v61 = vpop.f32.mrb[42].mxu0  ;;  %v1960_v7 = vstv %s1952_s1 }
 0x709   : > { %v2696_v23 = vmul.f32 -1.442695, %v1923_v49  ;;  %v1880_v43 = vpop.f32.mrb[39].mxu1  ;;  %v1921_v39 = vpop.f32.mrb[43].mxu0  ;;  %v2698_v4 = vmul.f32 -1.442695, %v1925_v48 }
 0x70a   : > { %v2697_v62 = vmul.f32 -1.442695, %v1924_v0  ;;  %v1958_v2 = vpop.permute.xlu1 %1957  ;;  %v2088_v61 = vpop.permute.xlu0 %2087  ;;  %v2090_v39 = vstv %s2082_s19 }
 0x70b   : > { %3100 = vpow2.f32 %v2696_v23  ;;  %vm1959_vm13 = vcmp.eq.s32.totalorder %v1958_v2, 1  ;;  %vm2089_vm15 = vcmp.eq.s32.totalorder %v2088_v61, 1  ;;  %v477_v61 = vld [vmem:[#allocation2 + $0x8] sm:$0xff] }
 0x70c   : > { %3102 = vpow2.f32 %v2697_v62 }
 0x70d   : > { %3104 = vtanh.f32 %v1926_v31 }
 0x70e   : > { %3106 = vpow2.f32 %v2698_v4 }
 0x715   : > { %v3101_v33 = vpop.eup %3100 }
 0x716   : > { %v1936_v35 = vadd.f32 1.0, %v3101_v33  ;;  %v3103_v36 = vpop.eup %3102 }
 0x717   : > { %v1937_v40 = vadd.f32 1.0, %v3103_v36  ;;  %v3105_v56 = vpop.eup %3104  ;;  %v3004_v36 = vld [vmem:[#allocation15] sm:$0xff]  }
 0x718   : > { %3108 = vrcp.f32 %v1936_v35  ;;  %v3107_v52 = vpop.eup %3106 }
 0x719   : > { %3110 = vrcp.f32 %v1937_v40  ;;  %v1938_v41 = vadd.f32 1.0, %v3107_v52  ;;  %v3005_v40 = vld [vmem:[#allocation15 + $0x8] sm:$0xff]   ;;  %v3007_v52 = vld [vmem:[#allocation15 + $0x18] sm:$0xff]  }
 0x71b   : > { %3112 = vrcp.f32 %v1938_v41 }
 0x722   : > { %v3109_v11 = vpop.eup %3108 }
 0x723   : > { %v1947_v25 = vmul.f32 %v3109_v11, %v3105_v56  ;;  %v3111_v38 = vpop.eup %3110  ;;  %v3006_v56 = vld [vmem:[#allocation15 + $0x10] sm:$0xff]   ;;  %v3009_v11 = vld [vmem:[#allocation15 + $0x28] sm:$0xff]  }
 0x724   : > { %v1946_v53 = vmul.f32 %v3111_v38, %v4282_v34  ;;  %v3011_v38 = vld [vmem:[#allocation15 + $0x38] sm:$0xff]  }
 0x725   : > { %v3113_v49 = vpop.eup %3112 }
 0x726   : > { %v4363_v9 = vadd.f32 %v1947_v25, %v1946_v53  ;;  %v3010_v25 = vld [vmem:[#allocation15 + $0x30] sm:$0xff]  }
 0x728   : > { %3114 = vtanh.f32 %v4363_v9 }
 0x732   : > { %v3115_v48 = vpop.eup %3114 }
 0x733   : > { %v1950_v6 = vmul.f32 %v3115_v48, %v3113_v49 }
 0x735   : > { %v1954_v32 = vmul.f32 %v1950_v6, %v4042_v42  ;;  %v1970_v0 = vpack.c.bf16 %v1950_v6, %v1950_v6 }
 0x737   : > { %v4368_v59 = vsel %vm1959_vm13, %v1954_v32, %v1960_v7  ;;  %2004 = vmatmul.mubr.bf16.vlgmr.msra.gmra.mrb[40].mxu1 %v1970_v0  ;;  %2045 = vmatmul.mubr.bf16.vlgmr.msra.gmra.mrb[44].mxu0 %v1970_v0  ;;  %v4524_v7 = vld [vmem:[#allocation33_spill] sm:$0xff]  ;;  %v4525_v0 = vld [vmem:[#allocation42_spill] sm:$0xff] }
 0x738   : > { %v1962_v34 = vmax.f32 %v4290_v37, %v4368_v59  ;;  %2102 = vmatpush1.bf16.msra.mxu1 %v4154_v50  ;;  %2143 = vmatpush1.bf16.msra.mxu0 %v4293_v26  ;;  %v4518_v50 = vmov 0.0   ;;  %v3008_v37 = vld [vmem:[#allocation15 + $0x20] sm:$0xff]  }
 0x739   : > { %2103 = vmatprep.subr.bf16.mxu1 %v4158_v30  ;;  %2144 = vmatprep.subr.bf16.mxu0 %v4297_v47  ;;  %v2215_v30 = vsel %vm2213_vm14, 1, %v4506_v8 }
 0x73a   : > { %2133 = vmatprep.mubr.bf16.mxu1 %v4506_v8  ;;  %2174 = vmatprep.mubr.bf16.mxu0 %v4506_v8 }
 0x73b   : > { %2217 = vperm.xlu1 %2899, %v2215_v30  }
 0x73c   : > { %2104 = vmatpush1.bf16.msra.mxu1 %v4164_v60  ;;  %2145 = vmatpush1.bf16.msra.mxu0 %v4303_v1 }
 0x73d   : > { %2105 = vmatprep.subr.bf16.mxu1 %v4168_v46  ;;  %2146 = vmatprep.subr.bf16.mxu0 %v4307_v54 }
 0x740   : > { %2106 = vmatpush1.bf16.msra.mxu1 %v4224_v45  ;;  %2147 = vmatpush1.bf16.msra.mxu0 %v4311_v28  ;;  %v4519_v45 = vld [vmem:[#allocation30_spill] sm:$0xff] }
 0x741   : > { %2107 = vmatprep.subr.bf16.mxu1 %v4228_v12  ;;  %2148 = vmatprep.subr.bf16.mxu0 %v4315_v51 }
 0x744   : > { %2108 = vmatpush1.bf16.msra.mxu1 %v4232_v13  ;;  %2149 = vmatpush1.bf16.msra.mxu0 %v4319_v55  ;;  %v4520_v13 = vld [vmem:[#allocation40_spill] sm:$0xff] }
 0x745   : > { %2109 = vmatprep.subr.bf16.mxu1 %v4236_v15  ;;  %2150 = vmatprep.subr.bf16.mxu0 %v4323_v57 }
 0x748   : > { %2110 = vmatpush1.bf16.msra.mxu1 %v4240_v16  ;;  %2151 = vmatpush1.bf16.msra.mxu0 %v4327_v58 }
 0x749   : > { %2111 = vmatprep.subr.bf16.mxu1 %v4244_v17  ;;  %2152 = vmatprep.subr.bf16.mxu0 %v4331_v27 }
 0x74c   : > { %2112 = vmatpush1.bf16.msra.mxu1 %v4248_v18  ;;  %2153 = vmatpush1.bf16.msra.mxu0 %v4335_v63  ;;  %v4521_v18 = vld [vmem:[#allocation31_spill] sm:$0xff] }
 0x74d   : > { %2113 = vmatprep.subr.bf16.mxu1 %v4252_v19  ;;  %2154 = vmatprep.subr.bf16.mxu0 %v4339_v3 }
 0x750   : > { %2114 = vmatpush1.bf16.msra.mxu1 %v4256_v20  ;;  %2155 = vmatpush1.bf16.msra.mxu0 %v4343_v5  ;;  %v4522_v20 = vld [vmem:[#allocation41_spill] sm:$0xff] }
 0x751   : > { %2115 = vmatprep.subr.bf16.mxu1 %v4260_v21  ;;  %2156 = vmatprep.subr.bf16.mxu0 %v4347_v10 }
 0x754   : > { %2116 = vmatpush1.bf16.msra.mxu1 %v4264_v22  ;;  %2157 = vmatpush1.bf16.msra.mxu0 %v4351_v14 }
 0x755   : > { %2771 = vmatprep.subr.bf16.mxu1 %v4518_v50 }
 0x80a   : > { %v2005_v60 = vpop.f32.mrb[40].mxu1  ;;  %v2046_v46 = vpop.f32.mrb[44].mxu0 }
 0x80b   : > { %v2053_v12 = vadd.f32 %v2005_v60, %v4519_v45  ;;  %v2055_v15 = vadd.f32 %v2046_v46, %v4520_v13  ;;  %v2007_v16 = vpop.f32.mrb[41].mxu1  ;;  %v2048_v17 = vpop.f32.mrb[45].mxu0 }
 0x80c   : > { %v2054_v19 = vadd.f32 %v2007_v16, %v4521_v18  ;;  %v2056_v21 = vadd.f32 %v2048_v17, %v4522_v20  ;;  %v2009_v22 = vpop.f32.mrb[42].mxu1  ;;  %v2050_v26 = vpop.f32.mrb[46].mxu0 }
 0x80d   : > { %v2699_v47 = vmul.f32 -1.442695, %v2053_v12  ;;  %v2010_v1 = vpop.f32.mrb[43].mxu1  ;;  %v2051_v24 = vpop.f32.mrb[47].mxu0  ;;  %v2701_v8 = vmul.f32 -1.442695, %v2055_v15 }
 0x80e   : > { %v2700_v54 = vmul.f32 -1.442695, %v2054_v19 }
 0x80f   : > { %3116 = vpow2.f32 %v2699_v47 }
 0x810   : > { %3118 = vpow2.f32 %v2700_v54 }
 0x811   : > { %3120 = vtanh.f32 %v2056_v21 }
 0x812   : > { %3122 = vpow2.f32 %v2701_v8  ;;  %v2218_v8 = vpop.permute.xlu1 %2217 }
 0x813   : > { %vm2219_vm1 = vcmp.eq.s32.totalorder %v2218_v8, 1 }
 0x819   : > { %v3117_v28 = vpop.eup %3116 }
 0x81a   : > { %v2066_v51 = vadd.f32 1.0, %v3117_v28  ;;  %v3119_v55 = vpop.eup %3118 }
 0x81b   : > { %v2067_v57 = vadd.f32 1.0, %v3119_v55  ;;  %v3121_v58 = vpop.eup %3120 }
 0x81c   : > { %3124 = vrcp.f32 %v2066_v51  ;;  %v3123_v27 = vpop.eup %3122  ;;  %v2220_v51 = vstv %s2212_s20 }
 0x81d   : > { %3126 = vrcp.f32 %v2067_v57  ;;  %v2068_v10 = vadd.f32 1.0, %v3123_v27  ;;  %v3012_v27 = vld [vmem:[#allocation13] sm:$0xff]  }
 0x81f   : > { %3128 = vrcp.f32 %v2068_v10  ;;  %v3016_v10 = vld [vmem:[#allocation13 + $0x20] sm:$0xff]  }
 0x826   : > { %v3125_v63 = vpop.eup %3124 }
 0x827   : > { %v2077_v3 = vmul.f32 %v3125_v63, %v3121_v58  ;;  %v3127_v5 = vpop.eup %3126 }
 0x828   : > { %v2076_v14 = vmul.f32 %v3127_v5, %v4363_v9  ;;  %v4523_v9 = vld [vmem:[#allocation32_spill] sm:$0xff]  ;;  %v3014_v5 = vld [vmem:[#allocation13 + $0x10] sm:$0xff]  }
 0x829   : > { %v3129_v44 = vpop.eup %3128 }
 0x82a   : > { %v4412_v31 = vadd.f32 %v2077_v3, %v2076_v14  ;;  %v3013_v3 = vld [vmem:[#allocation13 + $0x8] sm:$0xff]  }
 0x82b   : > { %v3017_v14 = vld [vmem:[#allocation13 + $0x28] sm:$0xff]  }
 0x82c   : > { %3130 = vtanh.f32 %v4412_v31 }
 0x836   : > { %v3131_v23 = vpop.eup %3130 }
 0x837   : > { %v2080_v43 = vmul.f32 %v3131_v23, %v3129_v44  ;;  %v3019_v44 = vld [vmem:[#allocation13 + $0x38] sm:$0xff]   ;;  %v478_v23 = vpack.c.bf16 %v477_v61, %v477_v61 }
 0x839   : > { %v2084_v62 = vmul.f32 %v2080_v43, %v4042_v42  ;;  %v2100_v4 = vpack.c.bf16 %v2080_v43, %v2080_v43  ;;  %v476_v43 = vld [vmem:[#allocation2] sm:$0xff] }
 0x83b   : > { %v2091_v33 = vsel %vm2089_vm15, %v2084_v62, %v2090_v39  ;;  %2134 = vmatmul.mubr.bf16.vlgmr.msra.gmra.mrb[44].mxu1 %v2100_v4  ;;  %2175 = vmatmul.mubr.bf16.vlgmr.msra.gmra.mrb[48].mxu0 %v2100_v4 }
 0x83c   : > { %v4420_v35 = vmax.f32 %v1962_v34, %v2091_v33  ;;  %2787 = vmatprep.mubr.msk.bf16.mxu1 %vm3409_vm0, %v4518_v50  ;;  %2772 = vmatpush3.bf16.msra.mxu1 %v3004_v36 }
 0x83d   : > { %2773 = vmatprep.subr.bf16.mxu1 %v4518_v50 }
 0x840   : > { %2774 = vmatpush3.bf16.msra.mxu1 %v3005_v40 }
 0x841   : > { %2775 = vmatprep.subr.bf16.mxu1 %v4518_v50 }
 0x844   : > { %2776 = vmatpush3.bf16.msra.mxu1 %v3006_v56 }
 0x845   : > { %2777 = vmatprep.subr.bf16.mxu1 %v4518_v50 }
 0x848   : > { %2778 = vmatpush3.bf16.msra.mxu1 %v3007_v52 }
 0x849   : > { %2779 = vmatprep.subr.bf16.mxu1 %v4518_v50 }
 0x84c   : > { %2780 = vmatpush3.bf16.msra.mxu1 %v3008_v37 }
 0x84d   : > { %2781 = vmatprep.subr.bf16.mxu1 %v4518_v50 }
 0x850   : > { %2782 = vmatpush3.bf16.msra.mxu1 %v3009_v11 }
 0x851   : > { %2783 = vmatprep.subr.bf16.mxu1 %v4518_v50 }
 0x854   : > { %2784 = vmatpush3.bf16.msra.mxu1 %v3010_v25 }
 0x855   : > { %2785 = vmatprep.subr.bf16.mxu1 %v4518_v50 }
 0x858   : > { %2786 = vmatpush3.bf16.msra.mxu1 %v3011_v38 }
 0x859   : > { %2791 = vmatprep.subr.bf16.mxu1 %v4518_v50 }
 0x90e   : > { %v2135_v41 = vpop.f32.mrb[44].mxu1  ;;  %v2176_v53 = vpop.f32.mrb[48].mxu0 }
 0x90f   : > { %v2183_v49 = vadd.f32 %v2135_v41, %v4523_v9  ;;  %v2185_v2 = vadd.f32 %v2176_v53, %v4029_v29  ;;  %v2137_v48 = vpop.f32.mrb[45].mxu1  ;;  %v2178_v6 = vpop.f32.mrb[49].mxu0 }
 0x910   : > { %v2184_v32 = vadd.f32 %v2137_v48, %v4524_v7  ;;  %v2186_v59 = vadd.f32 %v2178_v6, %v4525_v0  ;;  %v2139_v34 = vpop.f32.mrb[46].mxu1  ;;  %v2180_v30 = vpop.f32.mrb[50].mxu0 }
 0x911   : > { %v2702_v60 = vmul.f32 -1.442695, %v2183_v49  ;;  %v2140_v46 = vpop.f32.mrb[47].mxu1  ;;  %v2181_v45 = vpop.f32.mrb[51].mxu0  ;;  %v2704_v13 = vmul.f32 -1.442695, %v2185_v2 }
 0x912   : > { %v2703_v12 = vmul.f32 -1.442695, %v2184_v32 }
 0x913   : > { %3132 = vpow2.f32 %v2702_v60 }
 0x914   : > { %3134 = vpow2.f32 %v2703_v12 }
 0x915   : > { %3136 = vtanh.f32 %v2186_v59 }
 0x916   : > { %3138 = vpow2.f32 %v2704_v13 }
 0x91d   : > { %v3133_v15 = vpop.eup %3132 }
 0x91e   : > { %v2196_v16 = vadd.f32 1.0, %v3133_v15  ;;  %v3135_v29 = vpop.eup %3134 }
 0x91f   : > { %v2197_v17 = vadd.f32 1.0, %v3135_v29  ;;  %v3137_v18 = vpop.eup %3136 }
 0x920   : > { %3140 = vrcp.f32 %v2196_v16  ;;  %v3139_v19 = vpop.eup %3138 }
 0x921   : > { %3142 = vrcp.f32 %v2197_v17  ;;  %v2198_v26 = vadd.f32 1.0, %v3139_v19 }
 0x923   : > { %3144 = vrcp.f32 %v2198_v26 }
 0x92a   : > { %v3141_v20 = vpop.eup %3140 }
 0x92b   : > { %v2207_v21 = vmul.f32 %v3141_v20, %v3137_v18  ;;  %v3143_v22 = vpop.eup %3142 }
 0x92c   : > { %v2206_v47 = vmul.f32 %v3143_v22, %v4412_v31  ;;  %v3018_v31 = vld [vmem:[#allocation13 + $0x30] sm:$0xff]  }
 0x92d   : > { %v3145_v24 = vpop.eup %3144 }
 0x92e   : > { %v2208_v1 = vadd.f32 %v2207_v21, %v2206_v47 }
 0x930   : > { %3146 = vtanh.f32 %v2208_v1 }
 0x93a   : > { %v3147_v54 = vpop.eup %3146 }
 0x93b   : > { %v2210_v28 = vmul.f32 %v3147_v54, %v3145_v24 }
 0x93d   : > { %v2214_v55 = vmul.f32 %v2210_v28, %v4042_v42  ;;  %v3015_v42 = vld [vmem:[#allocation13 + $0x18] sm:$0xff]  }
 0x93f   : > { %v2221_v57 = vsel %vm2219_vm1, %v2214_v55, %v2220_v51 }
 0x940   : > { %v2222_v58 = vmax.f32 %v4420_v35, %v2221_v57 }
 0x942   : > { %v2239_v63 = vpack.c.bf16 %v2222_v58, %v2222_v58 }
 0x944   : > { %2788 = vmatmul.mubr.bf16.vlgmr.msra.gmra.mrb[48].mxu1 %v2239_v63 }
 0x945   : > { %2792 = vmatpush3.bf16.msra.mxu1 %v3012_v27  ;;  %2807 = vmatprep.mubr.msk.bf16.mxu1 %vm3409_vm0, %v4518_v50 }
 0x946   : > { %2793 = vmatprep.subr.bf16.mxu1 %v4518_v50 }
 0x949   : > { %2794 = vmatpush3.bf16.msra.mxu1 %v3013_v3 }
 0x94a   : > { %2795 = vmatprep.subr.bf16.mxu1 %v4518_v50 }
 0x94d   : > { %2796 = vmatpush3.bf16.msra.mxu1 %v3014_v5 }
 0x94e   : > { %2797 = vmatprep.subr.bf16.mxu1 %v4518_v50 }
 0x951   : > { %2798 = vmatpush3.bf16.msra.mxu1 %v3015_v42 }
 0x952   : > { %2799 = vmatprep.subr.bf16.mxu1 %v4518_v50 }
 0x955   : > { %2800 = vmatpush3.bf16.msra.mxu1 %v3016_v10 }
 0x956   : > { %2801 = vmatprep.subr.bf16.mxu1 %v4518_v50 }
 0x959   : > { %2802 = vmatpush3.bf16.msra.mxu1 %v3017_v14 }
 0x95a   : > { %2803 = vmatprep.subr.bf16.mxu1 %v4518_v50 }
 0x95d   : > { %2804 = vmatpush3.bf16.msra.mxu1 %v3018_v31 }
 0x95e   : > { %2805 = vmatprep.subr.bf16.mxu1 %v4518_v50 }
 0x961   : > { %2806 = vmatpush3.bf16.msra.mxu1 %v3019_v44 }
 0x964   : > { %2808 = vmatmul.mubr.bf16.vlgmr.msra.gmra.mrb[48].mxu1 %v478_v23 }
 0xa37   : > { %v2426_v39 = vpop.f32.mrb[48].mxu1 }
 0xa38   : > { %v2432_v62 = vmul.f32 %v2426_v39, %v476_v43  ;;  %v2809_v4 = vpop.f32.mrb[49].mxu1 }
 0xa39   : > { %v2429_v33 = vpop.f32.mrb[50].mxu1 }
 0xa3a   : > { %v2810_v35 = vpop.f32.mrb[51].mxu1  ;;  %2433 = vadd.xlane.f32.xlu0 %v2432_v62 }
 0xac7   : > { %v2434_v36 = vpop.xlane.xlu0 %2433 }
 0xac8   : > { %2435 = vst [vmem:[%s4526_s17] sm:$0xff] %v2434_v36 }
 0xac9 PF: > { %s32_s0 = sadd.s32 1, %s3387_s0  }
 0xaca   : > { %p29_p5 = scmp.ge.s32.totalorder %s32_s0, 4  }
 0xacc   :  { %31 = sbr.rel (!%p29_p5) target bundleno = 18 (0x12), region = 163 }
 0xad3   :  { %2455 = vsyncpa [#allocation9], 1 }
 0xad4   :  { %2457 = vsyncpa [#allocation9 + $0x1], 1 }
 0xad5   :  { %2458 = vsyncpa [#allocation11], 1 }
 0xad6   :  { %2459 = vsyncpa [#allocation14], 1 }
 0xad7   :  { %2460 = vsyncmov [#allocation4] }
 0xada   :  { %s2461_s25 = vpop.sfrf %2460 }
 0xadb   :  { %p2723_p6 = scmp.ne.s32.totalorder %s2461_s25, 0 }
 0xadd   :  { %2465 = shalt.err (%p2723_p6)  }

</bundles_post_ra>
